<compile_context>
chip_gen: v7x
topology: tpu7x:2x2x1
jax: 0.10.0
libtpu: 0.0.40
codegen_flags: <defaults>
</compile_context>

<pallas_src>
import math
from functools import partial

import jax
import jax.numpy as jnp
from jax.experimental import pallas as pl
from jax.experimental.pallas import tpu as pltpu


def _layer_norm(x, gamma, beta, eps=1e-5):
    mean = jnp.mean(x, axis=-1, keepdims=True)
    var = jnp.mean((x - mean) ** 2, axis=-1, keepdims=True)
    return (x - mean) * jax.lax.rsqrt(var + eps) * gamma + beta


def encoder_stack_kernel(x_ref, bias_ref,
                         wqkv_ref, wo_ref, w1_ref, w2_ref,
                         bqkv_ref, vecd_ref, bf1_ref,
                         out_ref, x_vmem, *, num_heads):
    l = pl.program_id(1)

    # Load the residual stream into VMEM scratch once per batch tile.
    @pl.when(l == 0)
    def _():
        x_vmem[...] = x_ref[...].astype(jnp.float32)

    Bt, S, D = x_vmem.shape
    H = num_heads
    Dh = D // H

    x = x_vmem[...]                               # (Bt, S, D) f32 residual stream
    x_rows = x.reshape(Bt * S, D)

    vec = vecd_ref[0]                             # (6, D) packed small params
    bo, g1, be1 = vec[0], vec[1], vec[2]
    bf2, g2, be2 = vec[3], vec[4], vec[5]
    bf1 = bf1_ref[0, 0]                           # (F,)

    # --- Multi-head self-attention ---------------------------------------
    # Fused QKV projection: one bf16 MXU matmul, f32 accumulation, one packed
    # bias add. 1/sqrt(Dh) is already folded into Wq/bq by the wrapper.
    qkv = jnp.dot(x_rows.astype(jnp.bfloat16), wqkv_ref[0],
                  preferred_element_type=jnp.float32) + bqkv_ref[0, 0]  # (Bt*S, 3D)
    q = qkv[:, 0 * D:1 * D]
    k = qkv[:, 1 * D:2 * D]
    v = qkv[:, 2 * D:3 * D]

    def split_heads(t):                           # (Bt*S, D) -> (Bt*H, S, Dh)
        t = t.reshape(Bt, S, H, Dh)
        t = jnp.transpose(t, (0, 2, 1, 3))
        return t.reshape(Bt * H, S, Dh)

    q3 = split_heads(q).astype(jnp.bfloat16)
    k3 = split_heads(k).astype(jnp.bfloat16)
    v3 = split_heads(v).astype(jnp.bfloat16)

    # Batched scores for all heads in one contraction (no per-head loop).
    scores = jnp.einsum('nqd,nkd->nqk', q3, k3,
                        preferred_element_type=jnp.float32)    # (Bt*H, S, S)
    bias = jnp.broadcast_to(bias_ref[...][:, None], (Bt, H, S, S))
    scores = scores + bias.reshape(Bt * H, S, S)               # additive mask
    scores = scores - jnp.max(scores, axis=-1, keepdims=True)
    p = jnp.exp(scores)
    denom = jnp.sum(p, axis=-1, keepdims=True)
    p = p * pl.reciprocal(denom, approx=True)                  # EUP divide

    ctx = jnp.einsum('nqk,nkd->nqd', p.astype(jnp.bfloat16), v3,
                     preferred_element_type=jnp.float32)       # (Bt*H, S, Dh)
    ctx = jnp.transpose(ctx.reshape(Bt, H, S, Dh), (0, 2, 1, 3)).reshape(Bt * S, D)

    attn = jnp.dot(ctx.astype(jnp.bfloat16), wo_ref[0],
                   preferred_element_type=jnp.float32) + bo

    # TODO(synk): dropout is identity in eval mode; not applied.
    x1 = _layer_norm(x_rows + attn, g1, be1)

    # --- Position-wise feed-forward ---------------------------------------
    h1 = jnp.dot(x1.astype(jnp.bfloat16), w1_ref[0],
                 preferred_element_type=jnp.float32) + bf1
    h1 = jnp.maximum(h1, 0.0)
    ff = jnp.dot(h1.astype(jnp.bfloat16), w2_ref[0],
                 preferred_element_type=jnp.float32) + bf2

    x2 = _layer_norm(x1 + ff, g2, be2)
    x_vmem[...] = x2.reshape(Bt, S, D)

    # Only write the output block after the last layer (resident accumulator).
    @pl.when(l == pl.num_programs(1) - 1)
    def _():
        out_ref[...] = x_vmem[...]


def pack_layer_params(layers, num_heads):
    d_model = layers[0]["wq"].shape[0]
    scale = 1.0 / math.sqrt(d_model // num_heads)
    # Fold 1/sqrt(Dh) into Wq / bq so the kernel never multiplies by it.
    wqkv = jnp.stack([jnp.concatenate([p["wq"] * scale, p["wk"], p["wv"]], axis=1)
                      for p in layers]).astype(jnp.bfloat16)        # (L, D, 3D)
    bqkv = jnp.stack([jnp.concatenate([p["bq"] * scale, p["bk"], p["bv"]])[None, :]
                      for p in layers]).astype(jnp.float32)         # (L, 1, 3D)
    wo = jnp.stack([p["wo"] for p in layers]).astype(jnp.bfloat16)  # (L, D, D)
    w1 = jnp.stack([p["w1"] for p in layers]).astype(jnp.bfloat16)  # (L, D, F)
    w2 = jnp.stack([p["w2"] for p in layers]).astype(jnp.bfloat16)  # (L, F, D)
    vecd = jnp.stack([jnp.stack([p["bo"], p["ln1_g"], p["ln1_b"],
                                 p["bf2"], p["ln2_g"], p["ln2_b"]])
                      for p in layers]).astype(jnp.float32)         # (L, 6, D)
    bf1v = jnp.stack([p["bf1"][None, :] for p in layers]).astype(jnp.float32)  # (L,1,F)
    return wqkv, bqkv, wo, w1, w2, vecd, bf1v


def positional_encoding(max_len, d_model):
    pos = jnp.arange(max_len, dtype=jnp.float32)[:, None]
    i = jnp.arange(0, d_model, 2, dtype=jnp.float32)
    div = jnp.exp(-math.log(10000.0) * i / d_model)
    pe = jnp.zeros((max_len, d_model), jnp.float32)
    pe = pe.at[:, 0::2].set(jnp.sin(pos * div))
    pe = pe.at[:, 1::2].set(jnp.cos(pos * div))
    return pe


def transformer_encoder(tokens, mask, params, num_heads, *, batch_tile=None):
    # Embedding lookup + positional encoding (glue; gather stays in JAX).
    emb = jnp.take(params["embedding"], tokens, axis=0)            # (B, S, D)
    B, S, D = emb.shape
    pe = positional_encoding(params["max_len"], D)[:S]
    x = (emb + pe[None]).astype(jnp.float32)

    # Additive attention bias: 0 where attend, -1e9 where masked (hoisted out
    # of the kernel; replaces per-head compare+select).
    mask_bias = ((mask - 1.0) * 1e9).astype(jnp.float32)

    wqkv, bqkv, wo, w1, w2, vecd, bf1v = pack_layer_params(params["layers"], num_heads)
    L = wqkv.shape[0]
    F = w1.shape[-1]

    Bt = batch_tile if batch_tile is not None else B   # batch tile (>=2 tiles feeds both v7x TCs when B is large)
    assert B % Bt == 0 and D % num_heads == 0

    grid = (B // Bt, L)   # layer axis last & sequential

    in_specs = [
        pl.BlockSpec((Bt, S, D), lambda bt, l: (bt, 0, 0)),     # activations (read at l==0 only)
        pl.BlockSpec((Bt, S, S), lambda bt, l: (bt, 0, 0)),     # additive mask bias (resident across l)
        pl.BlockSpec((1, D, 3 * D), lambda bt, l: (l, 0, 0)),   # fused wqkv (scale pre-folded)
        pl.BlockSpec((1, D, D), lambda bt, l: (l, 0, 0)),       # wo
        pl.BlockSpec((1, D, F), lambda bt, l: (l, 0, 0)),       # w1
        pl.BlockSpec((1, F, D), lambda bt, l: (l, 0, 0)),       # w2
        pl.BlockSpec((1, 1, 3 * D), lambda bt, l: (l, 0, 0)),   # packed qkv bias
        pl.BlockSpec((1, 6, D), lambda bt, l: (l, 0, 0)),       # packed D-sized vectors
        pl.BlockSpec((1, 1, F), lambda bt, l: (l, 0, 0)),       # bf1
    ]
    out_specs = pl.BlockSpec((Bt, S, D), lambda bt, l: (bt, 0, 0))

    kernel = partial(encoder_stack_kernel, num_heads=num_heads)
    return pl.pallas_call(
        kernel,
        out_shape=jax.ShapeDtypeStruct((B, S, D), jnp.float32),
        grid=grid,
        in_specs=in_specs,
        out_specs=out_specs,
        scratch_shapes=[pltpu.VMEM((Bt, S, D), jnp.float32)],
        compiler_params=pltpu.CompilerParams(
            dimension_semantics=("parallel", "arbitrary"),
            vmem_limit_bytes=32 * 1024 * 1024,
        ),
    )(x, mask_bias, wqkv, wo, w1, w2, bqkv, vecd, bf1v)


def transformer_encoder_ref(tokens, mask, params, num_heads):
    """Pure-JAX f32 reference (same math as the PyTorch module, eval mode)."""
    emb = jnp.take(params["embedding"], tokens, axis=0)
    B, S, D = emb.shape
    pe = positional_encoding(params["max_len"], D)[:S]
    x = (emb + pe[None]).astype(jnp.float32)
    H = num_heads
    Dh = D // H
    for p in params["layers"]:
        q = x @ p["wq"] + p["bq"]
        k = x @ p["wk"] + p["bk"]
        v = x @ p["wv"] + p["bv"]
        sh = lambda t: jnp.transpose(t.reshape(B, S, H, Dh), (0, 2, 1, 3))
        qh, kh, vh = sh(q), sh(k), sh(v)
        s = jnp.einsum('bhqd,bhkd->bhqk', qh, kh) / math.sqrt(Dh)
        s = jnp.where(mask[:, None] == 0.0, -1e9, s)
        a = jax.nn.softmax(s, axis=-1)
        ctx = jnp.einsum('bhqk,bhkd->bhqd', a, vh)
        ctx = jnp.transpose(ctx, (0, 2, 1, 3)).reshape(B, S, D)
        attn = ctx @ p["wo"] + p["bo"]
        x1 = _layer_norm(x + attn, p["ln1_g"], p["ln1_b"])
        h = jnp.maximum(x1 @ p["w1"] + p["bf1"], 0.0)
        ff = h @ p["w2"] + p["bf2"]
        x = _layer_norm(x1 + ff, p["ln2_g"], p["ln2_b"])
    return x


def init_params(key, vocab_size, d_model, num_layers, d_ff, max_len):
    keys = jax.random.split(key, 1 + num_layers)
    params = {
        "embedding": jax.random.normal(keys[0], (vocab_size, d_model), jnp.float32) * 0.02,
        "max_len": max_len,
        "layers": [],
    }
    s = 0.02
    for li in range(num_layers):
        ks = jax.random.split(keys[1 + li], 6)
        layer = {
            "wq": jax.random.normal(ks[0], (d_model, d_model), jnp.float32) * s,
            "bq": jnp.zeros((d_model,), jnp.float32),
            "wk": jax.random.normal(ks[1], (d_model, d_model), jnp.float32) * s,
            "bk": jnp.zeros((d_model,), jnp.float32),
            "wv": jax.random.normal(ks[2], (d_model, d_model), jnp.float32) * s,
            "bv": jnp.zeros((d_model,), jnp.float32),
            "wo": jax.random.normal(ks[3], (d_model, d_model), jnp.float32) * s,
            "bo": jnp.zeros((d_model,), jnp.float32),
            "ln1_g": jnp.ones((d_model,), jnp.float32),
            "ln1_b": jnp.zeros((d_model,), jnp.float32),
            "w1": jax.random.normal(ks[4], (d_model, d_ff), jnp.float32) * s,
            "bf1": jnp.zeros((d_ff,), jnp.float32),
            "w2": jax.random.normal(ks[5], (d_ff, d_model), jnp.float32) * s,
            "bf2": jnp.zeros((d_model,), jnp.float32),
            "ln2_g": jnp.ones((d_model,), jnp.float32),
            "ln2_b": jnp.zeros((d_model,), jnp.float32),
        }
        params["layers"].append(layer)
    return params


if __name__ == "__main__":
    vocab_size = 100
    d_model = 32
    num_layers = 2
    num_heads = 4
    d_ff = 64
    max_seq_len = 16
    B, S = 2, 8

    key = jax.random.PRNGKey(0)
    k_param, k_tok = jax.random.split(key)
    params = init_params(k_param, vocab_size, d_model, num_layers, d_ff, max_seq_len)

    tokens = jax.random.randint(k_tok, (B, S), 0, vocab_size, dtype=jnp.int32)
    mask = jnp.ones((B, S, S), jnp.float32)   # 1 = attend everywhere

    out = transformer_encoder(tokens, mask, params, num_heads)
    out = jax.block_until_ready(out)

    ref = transformer_encoder_ref(tokens, mask, params, num_heads)
    assert out.shape == (B, S, d_model), out.shape
    assert bool(jnp.all(jnp.isfinite(out)))
    assert bool(jnp.allclose(out, ref, atol=5e-2, rtol=5e-2)), \
        float(jnp.max(jnp.abs(out - ref)))
    print("KERNEL_OK")
</pallas_src>

<mosaic_0001>
module attributes {stable_mosaic.version = 11 : i64} {
  func.func @encoder_stack_kernel(%arg0: i32, %arg1: i32, %arg2: memref<2x8x32xf32, #tpu.memory_space<vmem>>, %arg3: memref<2x8x8xf32, #tpu.memory_space<vmem>>, %arg4: memref<1x32x96xbf16, #tpu.memory_space<vmem>>, %arg5: memref<1x32x32xbf16, #tpu.memory_space<vmem>>, %arg6: memref<1x32x64xbf16, #tpu.memory_space<vmem>>, %arg7: memref<1x64x32xbf16, #tpu.memory_space<vmem>>, %arg8: memref<1x1x96xf32, #tpu.memory_space<vmem>>, %arg9: memref<1x6x32xf32, #tpu.memory_space<vmem>>, %arg10: memref<1x1x64xf32, #tpu.memory_space<vmem>>, %arg11: memref<2x8x32xf32, #tpu.memory_space<vmem>>, %arg12: memref<2x8x32xf32, #tpu.memory_space<vmem>>) attributes {dimension_semantics = [#tpu.dimension_semantics<parallel>, #tpu.dimension_semantics<arbitrary>], iteration_bounds = array<i64: 1, 2>, scalar_prefetch = 0 : i64, scratch_operands = 1 : i64, tpu.core_type = #tpu.core_type<tc>, window_params = [{transform_indices = @transform_0, window_bounds = array<i64: 2, 8, 32>}, {transform_indices = @transform_1, window_bounds = array<i64: 2, 8, 8>}, {transform_indices = @transform_2, window_bounds = array<i64: 1, 32, 96>}, {transform_indices = @transform_3, window_bounds = array<i64: 1, 32, 32>}, {transform_indices = @transform_4, window_bounds = array<i64: 1, 32, 64>}, {transform_indices = @transform_5, window_bounds = array<i64: 1, 64, 32>}, {transform_indices = @transform_6, window_bounds = array<i64: 1, 1, 96>}, {transform_indices = @transform_7, window_bounds = array<i64: 1, 6, 32>}, {transform_indices = @transform_8, window_bounds = array<i64: 1, 1, 64>}, {transform_indices = @transform_9, window_bounds = array<i64: 2, 8, 32>}]} {
    %c0_i32 = arith.constant 0 : i32
    %0 = arith.cmpi eq, %arg1, %c0_i32 : i32
    %1 = arith.extui %0 : i1 to i32
    %c0_i32_0 = arith.constant 0 : i32
    %2 = arith.cmpi ne, %1, %c0_i32_0 : i32
    scf.if %2 {
      %c0_49 = arith.constant 0 : index
      %c0_50 = arith.constant 0 : index
      %c0_51 = arith.constant 0 : index
      %145 = vector.load %arg2[%c0_49, %c0_50, %c0_51] : memref<2x8x32xf32, #tpu.memory_space<vmem>>, vector<2x8x32xf32>
      %c0_52 = arith.constant 0 : index
      %c0_53 = arith.constant 0 : index
      %c0_54 = arith.constant 0 : index
      %146 = vector.load %arg12[%c0_52, %c0_53, %c0_54] : memref<2x8x32xf32, #tpu.memory_space<vmem>>, vector<2x8x32xf32>
      tpu.vector_store %arg12[%c0_52, %c0_53, %c0_54], %145 {strides = array<i32>} : memref<2x8x32xf32, #tpu.memory_space<vmem>>, vector<2x8x32xf32>,
    } else {
    }
    %c0 = arith.constant 0 : index
    %c0_1 = arith.constant 0 : index
    %c0_2 = arith.constant 0 : index
    %3 = vector.load %arg12[%c0, %c0_1, %c0_2] : memref<2x8x32xf32, #tpu.memory_space<vmem>>, vector<2x8x32xf32>
    %4 = vector.shape_cast %3 : vector<2x8x32xf32> to vector<16x32xf32>
    %c0_3 = arith.constant 0 : index
    %c0_4 = arith.constant 0 : index
    %c0_5 = arith.constant 0 : index
    %5 = vector.load %arg9[%c0_3, %c0_4, %c0_5] : memref<1x6x32xf32, #tpu.memory_space<vmem>>, vector<1x6x32xf32>
    %6 = vector.shape_cast %5 : vector<1x6x32xf32> to vector<6x32xf32>
    %7 = vector.extract_strided_slice %6 {offsets = [0, 0], sizes = [1, 32], strides = [1, 1]} : vector<6x32xf32> to vector<1x32xf32>
    %8 = vector.shape_cast %7 : vector<1x32xf32> to vector<32xf32>
    %9 = vector.extract_strided_slice %6 {offsets = [1, 0], sizes = [1, 32], strides = [1, 1]} : vector<6x32xf32> to vector<1x32xf32>
    %10 = vector.shape_cast %9 : vector<1x32xf32> to vector<32xf32>
    %11 = vector.extract_strided_slice %6 {offsets = [2, 0], sizes = [1, 32], strides = [1, 1]} : vector<6x32xf32> to vector<1x32xf32>
    %12 = vector.shape_cast %11 : vector<1x32xf32> to vector<32xf32>
    %13 = vector.extract_strided_slice %6 {offsets = [3, 0], sizes = [1, 32], strides = [1, 1]} : vector<6x32xf32> to vector<1x32xf32>
    %14 = vector.shape_cast %13 : vector<1x32xf32> to vector<32xf32>
    %15 = vector.extract_strided_slice %6 {offsets = [4, 0], sizes = [1, 32], strides = [1, 1]} : vector<6x32xf32> to vector<1x32xf32>
    %16 = vector.shape_cast %15 : vector<1x32xf32> to vector<32xf32>
    %17 = vector.extract_strided_slice %6 {offsets = [5, 0], sizes = [1, 32], strides = [1, 1]} : vector<6x32xf32> to vector<1x32xf32>
    %18 = vector.shape_cast %17 : vector<1x32xf32> to vector<32xf32>
    %c0_6 = arith.constant 0 : index
    %c0_7 = arith.constant 0 : index
    %c0_8 = arith.constant 0 : index
    %19 = vector.load %arg10[%c0_6, %c0_7, %c0_8] : memref<1x1x64xf32, #tpu.memory_space<vmem>>, vector<1x1x64xf32>
    %20 = vector.shape_cast %19 : vector<1x1x64xf32> to vector<64xf32>
    %21 = arith.truncf %4 : vector<16x32xf32> to vector<16x32xbf16>
    %c0_9 = arith.constant 0 : index
    %c0_10 = arith.constant 0 : index
    %c0_11 = arith.constant 0 : index
    %22 = vector.load %arg4[%c0_9, %c0_10, %c0_11] : memref<1x32x96xbf16, #tpu.memory_space<vmem>>, vector<1x32x96xbf16>
    %23 = vector.shape_cast %22 : vector<1x32x96xbf16> to vector<32x96xbf16>
    %cst = arith.constant dense<0.000000e+00> : vector<16x96xf32>
    %24 = tpu.matmul %21, %23, %cst {dimension_numbers = #tpu.dot_dimension_numbers<[1], [0], [0], [1], [0, 0, 1, 1], [], []>} : vector<16x32xbf16>, vector<32x96xbf16>, vector<16x96xf32> -> vector<16x96xf32>
    %c0_12 = arith.constant 0 : index
    %c0_13 = arith.constant 0 : index
    %c0_14 = arith.constant 0 : index
    %25 = vector.load %arg8[%c0_12, %c0_13, %c0_14] : memref<1x1x96xf32, #tpu.memory_space<vmem>>, vector<1x1x96xf32>
    %26 = vector.shape_cast %25 : vector<1x1x96xf32> to vector<96xf32>
    %27 = vector.shape_cast %26 : vector<96xf32> to vector<1x96xf32>
    %28 = vector.broadcast %27 : vector<1x96xf32> to vector<16x96xf32>
    %29 = arith.addf %24, %28 : vector<16x96xf32>
    %30 = vector.extract_strided_slice %29 {offsets = [0, 0], sizes = [16, 32], strides = [1, 1]} : vector<16x96xf32> to vector<16x32xf32>
    %31 = vector.extract_strided_slice %29 {offsets = [0, 32], sizes = [16, 32], strides = [1, 1]} : vector<16x96xf32> to vector<16x32xf32>
    %32 = vector.extract_strided_slice %29 {offsets = [0, 64], sizes = [16, 32], strides = [1, 1]} : vector<16x96xf32> to vector<16x32xf32>
    %33 = vector.shape_cast %30 : vector<16x32xf32> to vector<2x8x4x8xf32>
    %34 = tpu.transpose %33, [0, 2, 1, 3] : vector<2x8x4x8xf32> -> vector<2x4x8x8xf32>
    %35 = vector.shape_cast %34 : vector<2x4x8x8xf32> to vector<8x8x8xf32>
    %36 = arith.truncf %35 : vector<8x8x8xf32> to vector<8x8x8xbf16>
    %37 = vector.shape_cast %31 : vector<16x32xf32> to vector<2x8x4x8xf32>
    %38 = tpu.transpose %37, [0, 2, 1, 3] : vector<2x8x4x8xf32> -> vector<2x4x8x8xf32>
    %39 = vector.shape_cast %38 : vector<2x4x8x8xf32> to vector<8x8x8xf32>
    %40 = arith.truncf %39 : vector<8x8x8xf32> to vector<8x8x8xbf16>
    %41 = vector.shape_cast %32 : vector<16x32xf32> to vector<2x8x4x8xf32>
    %42 = tpu.transpose %41, [0, 2, 1, 3] : vector<2x8x4x8xf32> -> vector<2x4x8x8xf32>
    %43 = vector.shape_cast %42 : vector<2x4x8x8xf32> to vector<8x8x8xf32>
    %44 = arith.truncf %43 : vector<8x8x8xf32> to vector<8x8x8xbf16>
    "tpu.trace_start"() <{level = 10 : i32, message = "nqd,nkd->nqk"}> : () -> ()
    %cst_15 = arith.constant dense<0.000000e+00> : vector<8x8x8xf32>
    %45 = tpu.matmul %36, %40, %cst_15 {dimension_numbers = #tpu.dot_dimension_numbers<[2], [2], [1], [1], [0, 0, 0, 1, 1, 1], [0], [0]>} : vector<8x8x8xbf16>, vector<8x8x8xbf16>, vector<8x8x8xf32> -> vector<8x8x8xf32>
    "tpu.trace_stop"() : () -> ()
    %c0_16 = arith.constant 0 : index
    %c0_17 = arith.constant 0 : index
    %c0_18 = arith.constant 0 : index
    %46 = vector.load %arg3[%c0_16, %c0_17, %c0_18] : memref<2x8x8xf32, #tpu.memory_space<vmem>>, vector<2x8x8xf32>
    %47 = vector.shape_cast %46 : vector<2x8x8xf32> to vector<2x1x8x8xf32>
    %48 = vector.shape_cast %47 : vector<2x1x8x8xf32> to vector<2x1x8x8xf32>
    %49 = vector.broadcast %48 : vector<2x1x8x8xf32> to vector<2x4x8x8xf32>
    %50 = vector.shape_cast %49 : vector<2x4x8x8xf32> to vector<8x8x8xf32>
    %51 = arith.addf %45, %50 : vector<8x8x8xf32>
    %cst_19 = arith.constant dense<0xFF800000> : vector<8x8xf32>
    %52 = vector.multi_reduction <maximumf>, %51, %cst_19 [2] : vector<8x8x8xf32> to vector<8x8xf32>
    %53 = vector.shape_cast %52 : vector<8x8xf32> to vector<8x8x1xf32>
    %54 = vector.broadcast %53 : vector<8x8x1xf32> to vector<8x8x8xf32>
    %55 = arith.subf %51, %54 : vector<8x8x8xf32>
    %56 = math.exp %55 : vector<8x8x8xf32>
    %cst_20 = arith.constant dense<0.000000e+00> : vector<8x8xf32>
    %57 = vector.multi_reduction <add>, %56, %cst_20 [2] : vector<8x8x8xf32> to vector<8x8xf32>
    %58 = vector.shape_cast %57 : vector<8x8xf32> to vector<8x8x1xf32>
    %59 = tpu.reciprocal %58 {approx = true} : vector<8x8x1xf32> -> vector<8x8x1xf32>
    %60 = vector.broadcast %59 : vector<8x8x1xf32> to vector<8x8x8xf32>
    %61 = arith.mulf %56, %60 : vector<8x8x8xf32>
    %62 = arith.truncf %61 : vector<8x8x8xf32> to vector<8x8x8xbf16>
    "tpu.trace_start"() <{level = 10 : i32, message = "nqk,nkd->nqd"}> : () -> ()
    %cst_21 = arith.constant dense<0.000000e+00> : vector<8x8x8xf32>
    %63 = tpu.matmul %62, %44, %cst_21 {dimension_numbers = #tpu.dot_dimension_numbers<[2], [1], [1], [2], [0, 0, 0, 1, 1, 2], [0], [0]>} : vector<8x8x8xbf16>, vector<8x8x8xbf16>, vector<8x8x8xf32> -> vector<8x8x8xf32>
    "tpu.trace_stop"() : () -> ()
    %64 = vector.shape_cast %63 : vector<8x8x8xf32> to vector<2x4x8x8xf32>
    %65 = tpu.transpose %64, [0, 2, 1, 3] : vector<2x4x8x8xf32> -> vector<2x8x4x8xf32>
    %66 = vector.shape_cast %65 : vector<2x8x4x8xf32> to vector<16x32xf32>
    %67 = arith.truncf %66 : vector<16x32xf32> to vector<16x32xbf16>
    %c0_22 = arith.constant 0 : index
    %c0_23 = arith.constant 0 : index
    %c0_24 = arith.constant 0 : index
    %68 = vector.load %arg5[%c0_22, %c0_23, %c0_24] : memref<1x32x32xbf16, #tpu.memory_space<vmem>>, vector<1x32x32xbf16>
    %69 = vector.shape_cast %68 : vector<1x32x32xbf16> to vector<32x32xbf16>
    %cst_25 = arith.constant dense<0.000000e+00> : vector<16x32xf32>
    %70 = tpu.matmul %67, %69, %cst_25 {dimension_numbers = #tpu.dot_dimension_numbers<[1], [0], [0], [1], [0, 0, 1, 1], [], []>} : vector<16x32xbf16>, vector<32x32xbf16>, vector<16x32xf32> -> vector<16x32xf32>
    %71 = vector.shape_cast %8 : vector<32xf32> to vector<1x32xf32>
    %72 = vector.broadcast %71 : vector<1x32xf32> to vector<16x32xf32>
    %73 = arith.addf %70, %72 : vector<16x32xf32>
    %74 = arith.addf %4, %73 : vector<16x32xf32>
    %cst_26 = arith.constant dense<0.000000e+00> : vector<16xf32>
    %75 = vector.multi_reduction <add>, %74, %cst_26 [1] : vector<16x32xf32> to vector<16xf32>
    %76 = vector.shape_cast %75 : vector<16xf32> to vector<16x1xf32>
    %cst_27 = arith.constant 3.200000e+01 : f32
    %77 = vector.broadcast %cst_27 : f32 to vector<16x1xf32>
    %78 = arith.divf %76, %77 : vector<16x1xf32>
    %79 = vector.broadcast %78 : vector<16x1xf32> to vector<16x32xf32>
    %80 = arith.subf %74, %79 : vector<16x32xf32>
    %81 = arith.mulf %80, %80 : vector<16x32xf32>
    %cst_28 = arith.constant dense<0.000000e+00> : vector<16xf32>
    %82 = vector.multi_reduction <add>, %81, %cst_28 [1] : vector<16x32xf32> to vector<16xf32>
    %83 = vector.shape_cast %82 : vector<16xf32> to vector<16x1xf32>
    %cst_29 = arith.constant 3.200000e+01 : f32
    %84 = vector.broadcast %cst_29 : f32 to vector<16x1xf32>
    %85 = arith.divf %83, %84 : vector<16x1xf32>
    %86 = vector.broadcast %78 : vector<16x1xf32> to vector<16x32xf32>
    %87 = arith.subf %74, %86 : vector<16x32xf32>
    %cst_30 = arith.constant 9.99999974E-6 : f32
    %88 = vector.broadcast %cst_30 : f32 to vector<16x1xf32>
    %89 = arith.addf %85, %88 : vector<16x1xf32>
    %90 = math.rsqrt %89 : vector<16x1xf32>
    %91 = vector.broadcast %90 : vector<16x1xf32> to vector<16x32xf32>
    %92 = arith.mulf %87, %91 : vector<16x32xf32>
    %93 = vector.shape_cast %10 : vector<32xf32> to vector<1x32xf32>
    %94 = vector.broadcast %93 : vector<1x32xf32> to vector<16x32xf32>
    %95 = arith.mulf %92, %94 : vector<16x32xf32>
    %96 = vector.shape_cast %12 : vector<32xf32> to vector<1x32xf32>
    %97 = vector.broadcast %96 : vector<1x32xf32> to vector<16x32xf32>
    %98 = arith.addf %95, %97 : vector<16x32xf32>
    %99 = arith.truncf %98 : vector<16x32xf32> to vector<16x32xbf16>
    %c0_31 = arith.constant 0 : index
    %c0_32 = arith.constant 0 : index
    %c0_33 = arith.constant 0 : index
    %100 = vector.load %arg6[%c0_31, %c0_32, %c0_33] : memref<1x32x64xbf16, #tpu.memory_space<vmem>>, vector<1x32x64xbf16>
    %101 = vector.shape_cast %100 : vector<1x32x64xbf16> to vector<32x64xbf16>
    %cst_34 = arith.constant dense<0.000000e+00> : vector<16x64xf32>
    %102 = tpu.matmul %99, %101, %cst_34 {dimension_numbers = #tpu.dot_dimension_numbers<[1], [0], [0], [1], [0, 0, 1, 1], [], []>} : vector<16x32xbf16>, vector<32x64xbf16>, vector<16x64xf32> -> vector<16x64xf32>
    %103 = vector.shape_cast %20 : vector<64xf32> to vector<1x64xf32>
    %104 = vector.broadcast %103 : vector<1x64xf32> to vector<16x64xf32>
    %105 = arith.addf %102, %104 : vector<16x64xf32>
    %cst_35 = arith.constant 0.000000e+00 : f32
    %106 = vector.broadcast %cst_35 : f32 to vector<16x64xf32>
    %107 = arith.maximumf %105, %106 : vector<16x64xf32>
    %108 = arith.truncf %107 : vector<16x64xf32> to vector<16x64xbf16>
    %c0_36 = arith.constant 0 : index
    %c0_37 = arith.constant 0 : index
    %c0_38 = arith.constant 0 : index
    %109 = vector.load %arg7[%c0_36, %c0_37, %c0_38] : memref<1x64x32xbf16, #tpu.memory_space<vmem>>, vector<1x64x32xbf16>
    %110 = vector.shape_cast %109 : vector<1x64x32xbf16> to vector<64x32xbf16>
    %cst_39 = arith.constant dense<0.000000e+00> : vector<16x32xf32>
    %111 = tpu.matmul %108, %110, %cst_39 {dimension_numbers = #tpu.dot_dimension_numbers<[1], [0], [0], [1], [0, 0, 1, 1], [], []>} : vector<16x64xbf16>, vector<64x32xbf16>, vector<16x32xf32> -> vector<16x32xf32>
    %112 = vector.shape_cast %14 : vector<32xf32> to vector<1x32xf32>
    %113 = vector.broadcast %112 : vector<1x32xf32> to vector<16x32xf32>
    %114 = arith.addf %111, %113 : vector<16x32xf32>
    %115 = arith.addf %98, %114 : vector<16x32xf32>
    %cst_40 = arith.constant dense<0.000000e+00> : vector<16xf32>
    %116 = vector.multi_reduction <add>, %115, %cst_40 [1] : vector<16x32xf32> to vector<16xf32>
    %117 = vector.shape_cast %116 : vector<16xf32> to vector<16x1xf32>
    %cst_41 = arith.constant 3.200000e+01 : f32
    %118 = vector.broadcast %cst_41 : f32 to vector<16x1xf32>
    %119 = arith.divf %117, %118 : vector<16x1xf32>
    %120 = vector.broadcast %119 : vector<16x1xf32> to vector<16x32xf32>
    %121 = arith.subf %115, %120 : vector<16x32xf32>
    %122 = arith.mulf %121, %121 : vector<16x32xf32>
    %cst_42 = arith.constant dense<0.000000e+00> : vector<16xf32>
    %123 = vector.multi_reduction <add>, %122, %cst_42 [1] : vector<16x32xf32> to vector<16xf32>
    %124 = vector.shape_cast %123 : vector<16xf32> to vector<16x1xf32>
    %cst_43 = arith.constant 3.200000e+01 : f32
    %125 = vector.broadcast %cst_43 : f32 to vector<16x1xf32>
    %126 = arith.divf %124, %125 : vector<16x1xf32>
    %127 = vector.broadcast %119 : vector<16x1xf32> to vector<16x32xf32>
    %128 = arith.subf %115, %127 : vector<16x32xf32>
    %cst_44 = arith.constant 9.99999974E-6 : f32
    %129 = vector.broadcast %cst_44 : f32 to vector<16x1xf32>
    %130 = arith.addf %126, %129 : vector<16x1xf32>
    %131 = math.rsqrt %130 : vector<16x1xf32>
    %132 = vector.broadcast %131 : vector<16x1xf32> to vector<16x32xf32>
    %133 = arith.mulf %128, %132 : vector<16x32xf32>
    %134 = vector.shape_cast %16 : vector<32xf32> to vector<1x32xf32>
    %135 = vector.broadcast %134 : vector<1x32xf32> to vector<16x32xf32>
    %136 = arith.mulf %133, %135 : vector<16x32xf32>
    %137 = vector.shape_cast %18 : vector<32xf32> to vector<1x32xf32>
    %138 = vector.broadcast %137 : vector<1x32xf32> to vector<16x32xf32>
    %139 = arith.addf %136, %138 : vector<16x32xf32>
    %140 = vector.shape_cast %139 : vector<16x32xf32> to vector<2x8x32xf32>
    %c0_45 = arith.constant 0 : index
    %c0_46 = arith.constant 0 : index
    %c0_47 = arith.constant 0 : index
    %141 = vector.load %arg12[%c0_45, %c0_46, %c0_47] : memref<2x8x32xf32, #tpu.memory_space<vmem>>, vector<2x8x32xf32>
    tpu.vector_store %arg12[%c0_45, %c0_46, %c0_47], %140 {strides = array<i32>} : memref<2x8x32xf32, #tpu.memory_space<vmem>>, vector<2x8x32xf32>,
    %c1_i32 = arith.constant 1 : i32
    %142 = arith.cmpi eq, %arg1, %c1_i32 : i32
    %143 = arith.extui %142 : i1 to i32
    %c0_i32_48 = arith.constant 0 : i32
    %144 = arith.cmpi ne, %143, %c0_i32_48 : i32
    scf.if %144 {
      %c0_49 = arith.constant 0 : index
      %c0_50 = arith.constant 0 : index
      %c0_51 = arith.constant 0 : index
      %145 = vector.load %arg12[%c0_49, %c0_50, %c0_51] : memref<2x8x32xf32, #tpu.memory_space<vmem>>, vector<2x8x32xf32>
      %c0_52 = arith.constant 0 : index
      %c0_53 = arith.constant 0 : index
      %c0_54 = arith.constant 0 : index
      %146 = vector.load %arg11[%c0_52, %c0_53, %c0_54] : memref<2x8x32xf32, #tpu.memory_space<vmem>>, vector<2x8x32xf32>
      tpu.vector_store %arg11[%c0_52, %c0_53, %c0_54], %145 {strides = array<i32>} : memref<2x8x32xf32, #tpu.memory_space<vmem>>, vector<2x8x32xf32>,
    } else {
    }
    return
  }
  func.func @transform_0(%arg0: i32, %arg1: i32) -> (i32, i32, i32) {
    %c0_i32 = arith.constant 0 : i32
    %c0_i32_0 = arith.constant 0 : i32
    %c0_i32_1 = arith.constant 0 : i32
    return %arg0, %c0_i32, %c0_i32_0 : i32, i32, i32
  }
  func.func @transform_1(%arg0: i32, %arg1: i32) -> (i32, i32, i32) {
    %c0_i32 = arith.constant 0 : i32
    %c0_i32_0 = arith.constant 0 : i32
    %c0_i32_1 = arith.constant 0 : i32
    return %arg0, %c0_i32, %c0_i32_0 : i32, i32, i32
  }
  func.func @transform_2(%arg0: i32, %arg1: i32) -> (i32, i32, i32) {
    %c0_i32 = arith.constant 0 : i32
    %c0_i32_0 = arith.constant 0 : i32
    %c0_i32_1 = arith.constant 0 : i32
    return %arg1, %c0_i32, %c0_i32_0 : i32, i32, i32
  }
  func.func @transform_3(%arg0: i32, %arg1: i32) -> (i32, i32, i32) {
    %c0_i32 = arith.constant 0 : i32
    %c0_i32_0 = arith.constant 0 : i32
    %c0_i32_1 = arith.constant 0 : i32
    return %arg1, %c0_i32, %c0_i32_0 : i32, i32, i32
  }
  func.func @transform_4(%arg0: i32, %arg1: i32) -> (i32, i32, i32) {
    %c0_i32 = arith.constant 0 : i32
    %c0_i32_0 = arith.constant 0 : i32
    %c0_i32_1 = arith.constant 0 : i32
    return %arg1, %c0_i32, %c0_i32_0 : i32, i32, i32
  }
  func.func @transform_5(%arg0: i32, %arg1: i32) -> (i32, i32, i32) {
    %c0_i32 = arith.constant 0 : i32
    %c0_i32_0 = arith.constant 0 : i32
    %c0_i32_1 = arith.constant 0 : i32
    return %arg1, %c0_i32, %c0_i32_0 : i32, i32, i32
  }
  func.func @transform_6(%arg0: i32, %arg1: i32) -> (i32, i32, i32) {
    %c0_i32 = arith.constant 0 : i32
    %c0_i32_0 = arith.constant 0 : i32
    %c0_i32_1 = arith.constant 0 : i32
    return %arg1, %c0_i32, %c0_i32_0 : i32, i32, i32
  }
  func.func @transform_7(%arg0: i32, %arg1: i32) -> (i32, i32, i32) {
    %c0_i32 = arith.constant 0 : i32
    %c0_i32_0 = arith.constant 0 : i32
    %c0_i32_1 = arith.constant 0 : i32
    return %arg1, %c0_i32, %c0_i32_0 : i32, i32, i32
  }
  func.func @transform_8(%arg0: i32, %arg1: i32) -> (i32, i32, i32) {
    %c0_i32 = arith.constant 0 : i32
    %c0_i32_0 = arith.constant 0 : i32
    %c0_i32_1 = arith.constant 0 : i32
    return %arg1, %c0_i32, %c0_i32_0 : i32, i32, i32
  }
  func.func @transform_9(%arg0: i32, %arg1: i32) -> (i32, i32, i32) {
    %c0_i32 = arith.constant 0 : i32
    %c0_i32_0 = arith.constant 0 : i32
    %c0_i32_1 = arith.constant 0 : i32
    return %arg0, %c0_i32, %c0_i32_0 : i32, i32, i32
  }
}

</mosaic_0001>

<bundles_post_ra>
// kernel: tpu_custom_call.1
= control target key start
LH: loop header
LB: loop body
LE: loop exit
PB: predicated region body
PF: predicated region fallthrough
CT: control target
= control target key end

     0   :  { %s4291_s0 = inlined_call_operand.hbm [shape: f32[2,8,32], index: 0, kind: input, shape index: {}]   ;;  %s4292_s1 = inlined_call_operand.hbm [shape: f32[2,8,8], index: 1, kind: input, shape index: {}]   ;;  %s4293_s2 = inlined_call_operand.vmem [shape: bf16[2,32,96], index: 2, kind: input, shape index: {}]   ;;  %s4294_s3 = inlined_call_operand.vmem [shape: bf16[2,32,32], index: 3, kind: input, shape index: {}]   ;;  %s4295_s4 = inlined_call_operand.vmem [shape: bf16[2,32,64], index: 4, kind: input, shape index: {}]   ;;  %s4296_s5 = inlined_call_operand.vmem [shape: bf16[2,64,32], index: 5, kind: input, shape index: {}]   ;;  %s4297_s6 = inlined_call_operand.vmem [shape: f32[2,1,96], index: 6, kind: input, shape index: {}]   ;;  %s4298_s7 = inlined_call_operand.vmem [shape: f32[2,6,32], index: 7, kind: input, shape index: {}]   ;;  %s4299_s8 = inlined_call_operand.vmem [shape: f32[2,1,64], index: 8, kind: input, shape index: {}]   ;;  %s4300_s9 = inlined_call_operand.hbm [shape: f32[2,8,32], index: 9, kind: output, shape index: {}]  }
   0x1   :  { %4305 = sst [smem:[#allocation12_spill]] %s4291_s0 }
   0x2   :  { %4306 = sst [smem:[#allocation13_spill]] %s4292_s1 }
   0x3   :  { %4307 = sst [smem:[#allocation14_spill]] %s4293_s2 }
   0x4   :  { %14 = vsyncpa [#allocation4], 0 }
   0x5   :  { %15 = vsyncpa [#allocation7], 0 }
   0x6   :  { %16 = vsyncpa [#allocation5], 0  ;;  %s3655_s30 = smov 0   ;;  %s3657_s10 = smov 0  }
   0x7   :  { %s3659_s11 = smov 0  }
   0x8 LB: > { %s4304_s12 = sadd.s32 4294967295, %s3585_s11   ;;  %s31_s13 = sadd.s32 1, %s3581_s10  ;;  %s3585_s11 = sphi %s3659_s11, %s22_s11   ;;  %s3581_s10 = sphi %s3657_s10, %s4319_s10   ;;  %s3577_s30 = sphi %s3655_s30, %s4318_s30  }
   0x9   : > { %p32_p0 = scmp.ge.s32.totalorder %s31_s13, 2  ;;  %p3083_p1 = scmp.ge.s32.totalorder %s3585_s11, 1 }
   0xa   : > { %p299_p2 = scmp.lt.s32.totalorder %s3585_s11, 3  ;;  %p3682_p4 = scmp.eq.s32.totalorder %s4304_s12, 0 }
   0xb   : > { %s4321_s13 = smov (%p32_p0, %s31_s13), 0  ;;  %s3587_s16 = smov [#allocation3]  }
   0xc   : > { %p3676_p3 = pnand %p3083_p1, %p299_p2  ;;  %s314_s17 = sshll.u32 %s3587_s16, 4  ;;  %s315_s17 = int_to_ptr.vmem [resolvable:$true] %s314_s17 }
   0xd   : > { %s4309_s15 = scalar_select %p3682_p4, 1, 0 }
   0xe   : > { %s4308_s14 = scalar_select %p3676_p3, 1, 0 }
   0xf   : > { %p3347_p5 = pneg %p3676_p3  ;;  %s3588_s19 = smov [#allocation6]  }
  0x10   : > { %s330_s20 = sshll.u32 %s3588_s19, 4  ;;  %s4311_s0 = sld [smem:[#allocation12_spill]]  ;;  %s3694_s20 = int_to_ptr.vmem [resolvable:$true] %s330_s20 }
  0x11   : > { %p3690_p6 = pnand %p3682_p4, %p3347_p5 }
  0x13   : > { %p3471_p8 = pneg %p3690_p6 }
  0x16   : > { %s3469_s23 = scalar_lea.hbm %s4311_s0, 256 }
  0x17   : > { %p3470_p7 = scmp.ne.s32.totalorder %s4311_s0, %s3469_s23  ;;  %p3476_p11 = scmp.lt.u32.totalorder %s3469_s23, %s4311_s0 }
  0x19   : > { %p3472_p9 = pnand %p3471_p8, %p3470_p7 }
  0x1b   : > { %p3473_p10 = pneg %p3472_p9 }
  0x1d   : > { %p3478_p12 = pnand %p3476_p11, %p3473_p10 }
  0x1f   : > { %3481 = shalt.err (!%p3478_p12)
}
  0x20   : > { %s3482_s28 = scalar_lea.vmem %s315_s17, 256  ;;  %p3490_p2 = scmp.lt.s32.totalorder %s315_s17, %s315_s17 }
  0x21   : > { %p3483_p13 = scmp.ne.s32.totalorder %s315_s17, %s3482_s28  ;;  %p3491_p5 = scmp.lt.s32.totalorder %s3482_s28, %s3482_s28 }
  0x23   : > { %p3485_p0 = pnand %p3483_p13, %p3471_p8  ;;  %p3492_p4 = por %p3491_p5, %p3490_p2 }
  0x25   : > { %p3486_p1 = pneg %p3485_p0 }
  0x27   : > { %p3493_p3 = pnand %p3492_p4, %p3486_p1 }
  0x29   : > { %3496 = shalt.err (!%p3493_p3)
}
  0x2a   : > { %s3589_s29 = smov 128   ;;  %s3590_s16 = smov 8  }
  0x2b   : > { %3350 = dma.hbm_to_vmem [thread:$0]  (!%p3690_p6), %s4311_s0, 256, %s315_s17, [#allocation4], %s3589_s29, %s3589_s29, %s3590_s16  }
  0x2c   : > { %s4312_s1 = sld [smem:[#allocation13_spill]] }
  0x32   : > { %s3497_s24 = scalar_lea.hbm %s4312_s1, 256 }
  0x33   : > { %p3498_p7 = scmp.ne.s32.totalorder %s4312_s1, %s3497_s24  ;;  %p3504_p9 = scmp.lt.u32.totalorder %s3497_s24, %s4312_s1 }
  0x35   : > { %p3500_p3 = pnand %p3498_p7, %p3471_p8 }
  0x37   : > { %p3501_p4 = pneg %p3500_p3 }
  0x39   : > { %p3506_p10 = pnand %p3504_p9, %p3501_p4 }
  0x3b   : > { %3509 = shalt.err (!%p3506_p10)
}
  0x3c   : > { %s3510_s17 = scalar_lea.vmem %s3694_s20, 256  ;;  %p3518_p0 = scmp.lt.s32.totalorder %s3694_s20, %s3694_s20 }
  0x3d   : > { %p3511_p11 = scmp.ne.s32.totalorder %s3694_s20, %s3510_s17  ;;  %p3519_p1 = scmp.lt.s32.totalorder %s3510_s17, %s3510_s17 }
  0x3f   : > { %p3513_p12 = pnand %p3511_p11, %p3471_p8  ;;  %p3520_p2 = por %p3519_p1, %p3518_p0 }
  0x41   : > { %p3514_p13 = pneg %p3513_p12 }
  0x43   : > { %p3521_p5 = pnand %p3520_p2, %p3514_p13 }
  0x45   : > { %3524 = shalt.err (!%p3521_p5)
}
  0x46   : > { %3353 = dma.hbm_to_vmem [thread:$0]  (!%p3690_p6), %s4312_s1, 256, %s3694_s20, [#allocation7], %s3589_s29, %s3589_s29, %s3590_s16  }
  0x47   : > { %p4313_p7 = scmp.ne.s32.totalorder %s4308_s14, 0 }
  0x48   : > { %p4314_p3 = scmp.ne.s32.totalorder (!%p4313_p7), %s4309_s15, 0 }
  0x49   : > { %397 = sbr.rel (%p4313_p7) target bundleno = 2856 (0xb28), region = 56 }
  0x50   : > { %3564 = dma.done.wait (%p4314_p3), [#allocation4], 256  }
  0x51   : > { %3566 = vsyncadd (%p4314_p3), [#allocation4], 4294967040 }
  0x52   : > { %3568 = dma.done.wait (%p4314_p3), [#allocation7], 256  }
  0x53   : > { %3570 = vsyncadd (%p4314_p3), [#allocation7], 4294967040  ;;  %p459_p8 = scmp.lt.s32.totalorder %s3577_s30, 1  ;;  %s4315_s2 = sld [smem:[#allocation14_spill]] }
  0x54   : > { %p3099_p6 = scmp.ne.s32.totalorder %s3577_s30, 0 }
  0x55   : > { %s3755_s18 = scalar_select %p459_p8, %s3577_s30, 1 }
  0x56   : > { %494 = sbr.rel (%p3099_p6) target bundleno = 93 (0x5d), region = 68  ;;  %v495_v0 = vld [vmem:[#allocation3] sm:$0xff] (!%p3099_p6)  ;;  %vm497_vm0 = vcmask (!%p3099_p6), 261120   ;;  %v496_v1 = vld [vmem:[#allocation3 + $0x8] sm:$0xff] (!%p3099_p6) }
  0x57   : > { %s3153_s14 = sshll.u32 %s3755_s18, 4  ;;  %s3156_s20 = sshll.u32 %s3755_s18, 5  ;;  %498 = vst.msk [vmem:[#allocation2] sm:$0xff] (!%p3099_p6), %vm497_vm0, %v495_v0  ;;  %499 = vst.msk [vmem:[#allocation2 + $0x8] sm:$0xff] (!%p3099_p6), %vm497_vm0, %v496_v1 }
  0x58   : > { %s3765_s15 = scalar_lea.vmem %s4294_s3, %s3153_s14  ;;  %s3770_s27 = scalar_lea.vmem %s4295_s4, %s3153_s14 }
  0x59   : > { %s463_s22 = scalar_lea.vmem %s4315_s2, %s3153_s14  ;;  %s3775_s19 = scalar_lea.vmem %s4296_s5, %s3156_s20 }
  0x5a   : > { %s481_s29 = scalar_lea.vmem %s4297_s6, %s3755_s18  ;;  %s3098_s16 = sshll.u32 %s3755_s18, 3 }
  0x5b   : > { %s3785_s23 = scalar_lea.vmem %s4298_s7, %s3098_s16  ;;  %s488_s14 = scalar_lea.vmem %s4299_s8, %s3755_s18 }
  0x5d PF: > { %v3417_v2 = vld [vmem:[%s463_s22] sm:$0xff]   ;;  %v3591_v3 = vmov 0.0   ;;  %v3418_v4 = vld [vmem:[%s463_s22 + $0x8] sm:$0xff]   ;;  %vm3592_vm1 = vmmov 0   ;;  %vm528_vm2 = vcmask 261120   ;;  %s3593_s0 = smov 104   ;;  %v598_v23 = vlaneseq }
  0x5e   : > { %3203 = vmatprep.subr.bf16.mxu0 %v3591_v3  ;;  %3211 = vmatprep.subr.bf16.mxu1 %v3591_v3  ;;  %v500_v5 = vld [vmem:[#allocation2] sm:$0xff]  ;;  %v501_v6 = vld [vmem:[#allocation2 + $0x8] sm:$0xff]  ;;  %s3594_s1 = smov 120   ;;  %s3595_s2 = smov 112   ;;  %v3598_v21 = vmov 1983009808  }
  0x5f   : > { %3204 = vmatpush3.bf16.msra.mxu0 %v3417_v2  ;;  %3207 = vmatprep.mubr.msk.bf16.mxu0 %vm3592_vm1, %v3591_v3  ;;  %v504_v7 = vpack.c.bf16 %v501_v6, %v500_v5  ;;  %v3100_v8 = vld [vmem:[%s481_s29] ss:$0 sm:$0xff]  ;;  %s3596_s12 = smov 96   ;;  %s3597_s20 = smov 64   ;;  %v596_v22 = vunpack.c.l.s4 %v3598_v21  ;;  %v3828_v25 = vshrl.u32 %v598_v23, 7  ;;  %vm1483_vm3 = vcmask 64512  }
  0x60   : > { %3205 = vmatprep.subr.bf16.mxu0 %v3591_v3  ;;  %3213 = vmatprep.mubr.msk.bf16.mxu1 %vm3592_vm1, %v3591_v3  ;;  %v3599_v26 = vmov 1934713408   ;;  %vm1951_vm4 = vcmask 1043456   ;;  %s3600_s22 = smov 16   ;;  %s3602_s25 = smov 24   ;;  %vm2615_vm5 = vcmask 130048  }
  0x61   : > { %v597_v24 = vunpack.c.0.s8 %v596_v22  ;;  %v628_v27 = vunpack.c.l.s4 %v3599_v26  ;;  %vm2618_vm6 = vcmask 195584   ;;  %vm2833_vm7 = vcmask 523264   ;;  %p3148_p4 = scmp.ne.s32.totalorder %s3577_s30, 1 }
  0x63   : > { %3206 = vmatpush3.bf16.msra.mxu0 %v3418_v4  ;;  %v3832_v29 = vsub.s32 %v597_v24, %v3828_v25  ;;  %v629_v33 = vunpack.c.0.s8 %v628_v27 }
  0x64   : > { %3217 = vmatprep.subr.bf16.mxu0 %v3591_v3 }
  0x65   : > { %v3844_v38 = vsub.s32 %v629_v33, %v3828_v25 }
  0x66   : > { %3208 = vmatmul.mubr.msk.bf16.vlgmr.msra.gmra.mrb[0].mxu0 %vm528_vm2, %v504_v7 }
  0x67   : > { %3219 = vmatprep.mubr.msk.bf16.mxu0 %vm3592_vm1, %v3591_v3 }
 0x139   : > { %v566_v9 = vpop.f32.mrb[0].mxu0 }
 0x13a   : > { %v567_v10 = vadd.f32 %v3100_v8, %v566_v9  ;;  %v3209_v11 = vpop.f32.mrb[1].mxu0 }
 0x13b   : > { %v569_v12 = vpop.f32.mrb[2].mxu0 }
 0x13c   : > { %587 = vrot.lane.b32.xlu1 %v567_v10, %s3593_s0  ;;  %575 = vrot.lane.b32.xlu0 %v567_v10, %s3594_s1  ;;  %v3210_v13 = vpop.f32.mrb[3].mxu0  ;;  %v3803_v14 = vadd.f32 %v3100_v8, %v569_v12 }
 0x140   : > { %581 = vrot.lane.b32.xlu0 %v567_v10, %s3595_s2  ;;  %577 = vrot.lane.b32.xlu1 %v3803_v14, %s3594_s1 }
 0x144   : > { %583 = vrot.lane.b32.xlu0 %v3803_v14, %s3595_s2  ;;  %589 = vrot.lane.b32.xlu1 %v3803_v14, %s3593_s0 }
 0x148   : > { %873 = vrot.lane.b32.xlu0 %v567_v10, %s3596_s12 }
 0x1ae   : > { %v3808_v15 = vpop.permute.xlu0 %575  ;;  %v3810_v16 = vpop.permute.xlu1 %587 }
 0x1af   : > { %877 = vrot.lane.b32.xlu1 %v3808_v15, %s3596_s12  ;;  %v609_v30 = vcombine.low %v3808_v15, %v3810_v16  ;;  %v610_v32 = vcombine.high %v3808_v15, %v3810_v16 }
 0x1b1   : > { %v617_v35 = vrot.slane %v609_v30, %v3832_v29  ;;  %v624_v37 = vrot.slane %v610_v32, %v3832_v29 }
 0x1b2   : > { %v3813_v17 = vpop.permute.xlu0 %581  ;;  %v3817_v18 = vpop.permute.xlu1 %577 }
 0x1b3   : > { %881 = vrot.lane.b32.xlu0 %v3813_v17, %s3596_s12  ;;  %885 = vrot.lane.b32.xlu1 %v3810_v16, %s3596_s12  ;;  %v593_v28 = vcombine.low %v567_v10, %v3813_v17  ;;  %v594_v31 = vcombine.high %v567_v10, %v3813_v17 }
 0x1b5   : > { %v601_v34 = vrot.slane %v593_v28, %v3832_v29  ;;  %v608_v36 = vrot.slane %v594_v31, %v3832_v29 }
 0x1b6   : > { %v3821_v19 = vpop.permute.xlu0 %583  ;;  %v3823_v20 = vpop.permute.xlu1 %589 }
 0x1b7   : > { %875 = vrot.lane.b32.xlu0 %v3803_v14, %s3596_s12  ;;  %879 = vrot.lane.b32.xlu1 %v3817_v18, %s3596_s12  ;;  %v625_v39 = vcombine.low %v601_v34, %v617_v35  ;;  %v626_v40 = vcombine.high %v601_v34, %v617_v35  ;;  %v641_v41 = vcombine.low %v608_v36, %v624_v37 }
 0x1b8   : > { %v642_v42 = vcombine.high %v608_v36, %v624_v37  ;;  %v661_v43 = vcombine.low %v3803_v14, %v3821_v19  ;;  %v677_v44 = vcombine.low %v3817_v18, %v3823_v20  ;;  %v662_v47 = vcombine.high %v3803_v14, %v3821_v19 }
 0x1b9   : > { %v633_v45 = vrot.slane %v625_v39, %v3844_v38  ;;  %v640_v46 = vrot.slane %v626_v40, %v3844_v38  ;;  %v678_v48 = vcombine.high %v3817_v18, %v3823_v20  ;;  %v649_v49 = vrot.slane %v641_v41, %v3844_v38 }
 0x1ba   : > { %v656_v50 = vrot.slane %v642_v42, %v3844_v38  ;;  %v669_v51 = vrot.slane %v661_v43, %v3832_v29  ;;  %v685_v52 = vrot.slane %v677_v44, %v3832_v29  ;;  %v874_v53 = vpop.permute.xlu0 %873  ;;  %v676_v57 = vrot.slane %v662_v47, %v3832_v29 }
 0x1bb   : > { %883 = vrot.lane.b32.xlu0 %v3821_v19, %s3596_s12  ;;  %887 = vrot.lane.b32.xlu1 %v3823_v20, %s3596_s12  ;;  %v729_v55 = vcombine.low %v633_v45, %v640_v46  ;;  %v3104_v56 = vcombine.high %v633_v45, %v640_v46  ;;  %v692_v58 = vrot.slane %v678_v48, %v3832_v29 }
 0x1bc   : > { %v745_v59 = vcombine.low %v649_v49, %v656_v50  ;;  %v3105_v60 = vcombine.high %v649_v49, %v656_v50  ;;  %v693_v61 = vcombine.low %v669_v51, %v685_v52  ;;  %v694_v62 = vcombine.high %v669_v51, %v685_v52 }
 0x1bd   : > { %v709_v6 = vcombine.low %v676_v57, %v692_v58  ;;  %v710_v7 = vcombine.high %v676_v57, %v692_v58  ;;  %v3863_v8 = vrot.slane %v729_v55, %v3832_v29  ;;  %v3866_v9 = vrot.slane %v3104_v56, %v3832_v29 }
 0x1be   : > { %v3873_v21 = vrot.slane %v693_v61, %v3844_v38  ;;  %v3876_v22 = vrot.slane %v694_v62, %v3844_v38  ;;  %v3879_v24 = vrot.slane %v745_v59, %v3832_v29  ;;  %v3882_v26 = vrot.slane %v3105_v60, %v3832_v29 }
 0x1bf   : > { %1177 = vrot.lane.b32.xlu1 %v567_v10, %s3597_s20  ;;  %v3885_v33 = vrot.slane %v709_v6, %v3844_v38  ;;  %v3888_v34 = vrot.slane %v710_v7, %v3844_v38  ;;  %v761_v42 = vcombine.low %v3863_v8, %v3866_v9  ;;  %v762_v43 = vcombine.high %v3863_v8, %v3866_v9 }
 0x1c0   : > { %v797_v40 = vcombine.low %v3873_v21, %v3876_v22  ;;  %v777_v44 = vcombine.low %v3879_v24, %v3882_v26 }
 0x221   : > { %v878_v54 = vpop.permute.xlu1 %877 }
 0x225   : > { %v882_v63 = vpop.permute.xlu0 %881  ;;  %v886_v0 = vpop.permute.xlu1 %885 }
 0x226   : > { %v897_v1 = vcombine.low %v874_v53, %v882_v63  ;;  %v898_v2 = vcombine.high %v874_v53, %v882_v63  ;;  %v913_v4 = vcombine.low %v878_v54, %v886_v0  ;;  %v914_v5 = vcombine.high %v878_v54, %v886_v0 }
 0x228   : > { %v905_v10 = vrot.slane %v897_v1, %v3832_v29  ;;  %v912_v11 = vrot.slane %v898_v2, %v3832_v29  ;;  %v921_v12 = vrot.slane %v913_v4, %v3832_v29  ;;  %v928_v13 = vrot.slane %v914_v5, %v3832_v29 }
 0x229   : > { %v876_v23 = vpop.permute.xlu0 %875  ;;  %v880_v32 = vpop.permute.xlu1 %879 }
 0x22a   : > { %v929_v27 = vcombine.low %v905_v10, %v921_v12  ;;  %v930_v28 = vcombine.high %v905_v10, %v921_v12  ;;  %v945_v30 = vcombine.low %v912_v11, %v928_v13  ;;  %v946_v31 = vcombine.high %v912_v11, %v928_v13 }
 0x22c   : > { %v937_v35 = vrot.slane %v929_v27, %v3844_v38  ;;  %v944_v36 = vrot.slane %v930_v28, %v3844_v38  ;;  %v953_v37 = vrot.slane %v945_v30, %v3844_v38  ;;  %v960_v39 = vrot.slane %v946_v31, %v3844_v38 }
 0x22d   : > { %v884_v41 = vpop.permute.xlu0 %883  ;;  %v888_v49 = vpop.permute.xlu1 %887  ;;  %v3106_v30 = vcombine.high %v3873_v21, %v3876_v22 }
 0x22e   : > { %v1033_v45 = vcombine.low %v937_v35, %v944_v36  ;;  %v3108_v46 = vcombine.high %v937_v35, %v944_v36  ;;  %v1049_v47 = vcombine.low %v953_v37, %v960_v39  ;;  %v3109_v48 = vcombine.high %v953_v37, %v960_v39 }
 0x22f   : > { %v965_v50 = vcombine.low %v876_v23, %v884_v41  ;;  %v966_v51 = vcombine.high %v876_v23, %v884_v41  ;;  %v981_v52 = vcombine.low %v880_v32, %v888_v49  ;;  %v982_v53 = vcombine.high %v880_v32, %v888_v49 }
 0x230   : > { %v1040_v54 = vrot.slane %v1033_v45, %v3832_v29  ;;  %v1048_v55 = vrot.slane %v3108_v46, %v3832_v29  ;;  %v1056_v56 = vrot.slane %v1049_v47, %v3832_v29  ;;  %v1064_v57 = vrot.slane %v3109_v48, %v3832_v29 }
 0x231   : > { %v973_v58 = vrot.slane %v965_v50, %v3832_v29  ;;  %v980_v59 = vrot.slane %v966_v51, %v3832_v29  ;;  %v989_v60 = vrot.slane %v981_v52, %v3832_v29  ;;  %v996_v61 = vrot.slane %v982_v53, %v3832_v29 }
 0x232   : > { %v1065_v62 = vcombine.low %v1040_v54, %v1048_v55  ;;  %v1081_v63 = vcombine.low %v1056_v56, %v1064_v57  ;;  %v1066_v0 = vcombine.high %v1040_v54, %v1048_v55  ;;  %v1082_v1 = vcombine.high %v1056_v56, %v1064_v57 }
 0x233   : > { %v997_v2 = vcombine.low %v973_v58, %v989_v60  ;;  %v998_v4 = vcombine.high %v973_v58, %v989_v60  ;;  %v1013_v5 = vcombine.low %v980_v59, %v996_v61  ;;  %v1014_v6 = vcombine.high %v980_v59, %v996_v61 }
 0x234   : > { %v1073_v7 = vrot.slane %v1065_v62, %v3844_v38  ;;  %v1089_v10 = vrot.slane %v1081_v63, %v3844_v38  ;;  %v1080_v11 = vrot.slane %v1066_v0, %v3844_v38  ;;  %v1096_v12 = vrot.slane %v1082_v1, %v3844_v38 }
 0x235   : > { %v1005_v13 = vrot.slane %v997_v2, %v3844_v38  ;;  %v1012_v23 = vrot.slane %v998_v4, %v3844_v38  ;;  %v1021_v27 = vrot.slane %v1013_v5, %v3844_v38  ;;  %v1028_v28 = vrot.slane %v1014_v6, %v3844_v38 }
 0x236   : > { %v1097_v31 = vcombine.low %v1073_v7, %v1089_v10  ;;  %v1098_v32 = vcombine.high %v1073_v7, %v1089_v10  ;;  %v769_v35 = vrot.slane %v761_v42, %v3844_v38  ;;  %v785_v47 = vrot.slane %v777_v44, %v3844_v38 }
 0x237   : > { %v1101_v36 = vcombine.low %v1005_v13, %v1012_v23  ;;  %v3110_v37 = vcombine.high %v1005_v13, %v1012_v23  ;;  %v1117_v39 = vcombine.low %v1021_v27, %v1028_v28  ;;  %v3111_v41 = vcombine.high %v1021_v27, %v1028_v28 }
 0x238   : > { %v1169_v45 = vpack.c.bf16 %v1097_v31, %v1097_v31  ;;  %v1170_v46 = vpack.c.bf16 %v1098_v32, %v1098_v32  ;;  %v1099_v48 = vcombine.low %v1080_v11, %v1096_v12  ;;  %v813_v42 = vcombine.low %v3885_v33, %v3888_v34 }
 0x239   : > { %v1108_v49 = vrot.slane %v1101_v36, %v3832_v29  ;;  %v1116_v50 = vrot.slane %v3110_v37, %v3832_v29  ;;  %v1124_v51 = vrot.slane %v1117_v39, %v3832_v29  ;;  %v1132_v52 = vrot.slane %v3111_v41, %v3832_v29 }
 0x23a   : > { %v1488_v53 = vsel %vm1483_vm3, %v1169_v45, 0  ;;  %v1534_v54 = vsel %vm1483_vm3, %v1170_v46, 0  ;;  %v1100_v55 = vcombine.high %v1080_v11, %v1096_v12  ;;  %v3107_v44 = vcombine.high %v3885_v33, %v3888_v34 }
 0x23b   : > { %3212 = vmatpush3.bf16.xpose.msra.mxu1 %v1488_v53  ;;  %3218 = vmatpush3.bf16.xpose.msra.mxu0 %v1534_v54  ;;  %v1133_v56 = vcombine.low %v1108_v49, %v1116_v50  ;;  %v1149_v57 = vcombine.low %v1124_v51, %v1132_v52  ;;  %v778_v58 = vcombine.high %v3879_v24, %v3882_v26 }
 0x23c   : > { %v793_v59 = vcombine.low %v769_v35, %v785_v47  ;;  %v794_v60 = vcombine.high %v769_v35, %v785_v47  ;;  %3223 = vmatprep.subr.bf16.mxu1 %v3591_v3  ;;  %3229 = vmatprep.subr.bf16.mxu0 %v3591_v3  ;;  %v1171_v61 = vpack.c.bf16 %v1099_v48, %v1099_v48 }
 0x23d   : > { %v1172_v62 = vpack.c.bf16 %v1100_v55, %v1100_v55  ;;  %v1141_v63 = vrot.slane %v1133_v56, %v3844_v38  ;;  %v1157_v0 = vrot.slane %v1149_v57, %v3844_v38  ;;  %v804_v33 = vrot.slane %v797_v40, %v3832_v29 }
 0x23e   : > { %v812_v34 = vrot.slane %v3106_v30, %v3832_v29  ;;  %v820_v24 = vrot.slane %v813_v42, %v3832_v29  ;;  %v776_v26 = vrot.slane %v762_v43, %v3844_v38  ;;  %v828_v1 = vrot.slane %v3107_v44, %v3832_v29 }
 0x23f   : > { %v865_v2 = vpack.c.bf16 %v793_v59, %v793_v59  ;;  %v866_v4 = vpack.c.bf16 %v794_v60, %v794_v60  ;;  %v792_v5 = vrot.slane %v778_v58, %v3844_v38  ;;  %v1580_v6 = vsel %vm1483_vm3, %v1171_v61, 0  ;;  %v1481_v58 = vld [vmem:[#allocation6] sm:$0xff] }
 0x240   : > { %v1134_v7 = vcombine.high %v1108_v49, %v1116_v50  ;;  %v1626_v21 = vsel %vm1483_vm3, %v1172_v62, 0  ;;  %v1165_v22 = vcombine.low %v1141_v63, %v1157_v0  ;;  %v1166_v40 = vcombine.high %v1141_v63, %v1157_v0 }
 0x241   : > { %v1150_v10 = vcombine.high %v1124_v51, %v1132_v52  ;;  %v829_v8 = vcombine.low %v804_v33, %v812_v34  ;;  %v795_v9 = vcombine.low %v776_v26, %v792_v5  ;;  %v796_v43 = vcombine.high %v776_v26, %v792_v5 }
 0x242   : > { %3214 = vmatmul.mubr.msk.bf16.vlgmr.msra.gmra.mrb[0].mxu1 %vm1483_vm3, %v865_v2  ;;  %3220 = vmatmul.mubr.msk.bf16.vlgmr.msra.gmra.mrb[4].mxu0 %vm1483_vm3, %v866_v4  ;;  %v845_v11 = vcombine.low %v820_v24, %v828_v1  ;;  %v1173_v12 = vpack.c.bf16 %v1165_v22, %v1165_v22  ;;  %v1174_v13 = vpack.c.bf16 %v1166_v40, %v1166_v40 }
 0x243   : > { %3224 = vmatpush3.bf16.xpose.msra.mxu1 %v1580_v6  ;;  %3230 = vmatpush3.bf16.xpose.msra.mxu0 %v1626_v21  ;;  %v1148_v23 = vrot.slane %v1134_v7, %v3844_v38  ;;  %v1164_v27 = vrot.slane %v1150_v10, %v3844_v38  ;;  %v867_v28 = vpack.c.bf16 %v795_v9, %v795_v9 }
 0x244   : > { %3225 = vmatprep.mubr.msk.bf16.mxu1 %vm3592_vm1, %v3591_v3  ;;  %3231 = vmatprep.mubr.msk.bf16.mxu0 %vm3592_vm1, %v3591_v3  ;;  %v868_v30 = vpack.c.bf16 %v796_v43, %v796_v43  ;;  %v837_v31 = vrot.slane %v829_v8, %v3844_v38  ;;  %v853_v32 = vrot.slane %v845_v11, %v3844_v38  ;;  %v1672_v35 = vsel %vm1483_vm3, %v1173_v12, 0  ;;  %v1482_v11 = vld [vmem:[#allocation6 + $0x8] sm:$0xff] }
 0x245   : > { %3235 = vmatprep.subr.bf16.mxu1 %v3591_v3  ;;  %3241 = vmatprep.subr.bf16.mxu0 %v3591_v3  ;;  %v1718_v36 = vsel %vm1483_vm3, %v1174_v13, 0  ;;  %v1167_v37 = vcombine.low %v1148_v23, %v1164_v27  ;;  %v1168_v39 = vcombine.high %v1148_v23, %v1164_v27  ;;  %v830_v41 = vcombine.high %v804_v33, %v812_v34 }
 0x246   : > { %v861_v45 = vcombine.low %v837_v31, %v853_v32  ;;  %v862_v46 = vcombine.high %v837_v31, %v853_v32  ;;  %v846_v47 = vcombine.high %v820_v24, %v828_v1 }
 0x247   : > { %v1175_v48 = vpack.c.bf16 %v1167_v37, %v1167_v37  ;;  %v1176_v49 = vpack.c.bf16 %v1168_v39, %v1168_v39  ;;  %v844_v52 = vrot.slane %v830_v41, %v3844_v38 }
 0x248   : > { %v869_v50 = vpack.c.bf16 %v861_v45, %v861_v45  ;;  %v870_v51 = vpack.c.bf16 %v862_v46, %v862_v46  ;;  %v860_v42 = vrot.slane %v846_v47, %v3844_v38 }
 0x249   : > { %v1764_v53 = vsel %vm1483_vm3, %v1175_v48, 0  ;;  %v1810_v54 = vsel %vm1483_vm3, %v1176_v49, 0 }
 0x24a   : > { %3226 = vmatmul.mubr.msk.bf16.vlgmr.msra.gmra.mrb[4].mxu1 %vm1483_vm3, %v867_v28  ;;  %3232 = vmatmul.mubr.msk.bf16.vlgmr.msra.gmra.mrb[8].mxu0 %vm1483_vm3, %v868_v30  ;;  %v863_v55 = vcombine.low %v844_v52, %v860_v42  ;;  %v864_v44 = vcombine.high %v844_v52, %v860_v42 }
 0x24b   : > { %3236 = vmatpush3.bf16.xpose.msra.mxu1 %v1672_v35  ;;  %3242 = vmatpush3.bf16.xpose.msra.mxu0 %v1718_v36 }
 0x24c   : > { %3237 = vmatprep.mubr.msk.bf16.mxu1 %vm3592_vm1, %v3591_v3  ;;  %3243 = vmatprep.mubr.msk.bf16.mxu0 %vm3592_vm1, %v3591_v3  ;;  %v871_v56 = vpack.c.bf16 %v863_v55, %v863_v55  ;;  %v872_v57 = vpack.c.bf16 %v864_v44, %v864_v44  ;;  %v1178_v44 = vpop.permute.xlu1 %1177 }
 0x24d   : > { %3247 = vmatprep.subr.bf16.mxu1 %v3591_v3  ;;  %3253 = vmatprep.subr.bf16.mxu0 %v3591_v3 }
 0x252   : > { %3238 = vmatmul.mubr.msk.bf16.vlgmr.msra.gmra.mrb[8].mxu1 %vm1483_vm3, %v869_v50  ;;  %3244 = vmatmul.mubr.msk.bf16.vlgmr.msra.gmra.mrb[12].mxu0 %vm1483_vm3, %v870_v51 }
 0x253   : > { %3248 = vmatpush3.bf16.xpose.msra.mxu1 %v1764_v53  ;;  %3254 = vmatpush3.bf16.xpose.msra.mxu0 %v1810_v54 }
 0x254   : > { %3249 = vmatprep.mubr.msk.bf16.mxu1 %vm3592_vm1, %v3591_v3  ;;  %3255 = vmatprep.mubr.msk.bf16.mxu0 %vm3592_vm1, %v3591_v3 }
 0x255   : > { %3259 = vmatprep.subr.bf16.mxu1 %v3591_v3  ;;  %3265 = vmatprep.subr.bf16.mxu0 %v3591_v3 }
 0x25a   : > { %3250 = vmatmul.mubr.msk.bf16.vlgmr.msra.gmra.mrb[12].mxu1 %vm1483_vm3, %v871_v56  ;;  %3256 = vmatmul.mubr.msk.bf16.vlgmr.msra.gmra.mrb[16].mxu0 %vm1483_vm3, %v872_v57 }
 0x25b   : > { %3261 = vmatprep.mubr.msk.bf16.mxu1 %vm3592_vm1, %v3591_v3  ;;  %3267 = vmatprep.mubr.msk.bf16.mxu0 %vm3592_vm1, %v3591_v3 }
 0x315   : > { %v1524_v59 = vpop.f32.mrb[0].mxu1  ;;  %v1570_v60 = vpop.f32.mrb[4].mxu0 }
 0x316   : > { %v3992_v61 = vadd.f32 %v1524_v59, %v1481_v58  ;;  %v3994_v62 = vadd.f32 %v1570_v60, %v1481_v58  ;;  %v3215_v63 = vpop.f32.mrb[1].mxu1  ;;  %v3221_v0 = vpop.f32.mrb[5].mxu0 }
 0x317   : > { %v1527_v33 = vpop.f32.mrb[2].mxu1  ;;  %v1573_v34 = vpop.f32.mrb[6].mxu0 }
 0x318   : > { %v3216_v24 = vpop.f32.mrb[3].mxu1  ;;  %v3222_v26 = vpop.f32.mrb[7].mxu0  ;;  %v1852_v1 = vsel %vm1483_vm3, %v3992_v61, -inf  ;;  %v1855_v2 = vsel %vm1483_vm3, %v3994_v62, -inf }
 0x319   : > { %1853 = vmax.xlane.f32.xlu0 %v1852_v1  ;;  %1856 = vmax.xlane.f32.xlu1 %v1855_v2 }
 0x31d   : > { %v1616_v4 = vpop.f32.mrb[4].mxu1  ;;  %v1662_v5 = vpop.f32.mrb[8].mxu0 }
 0x31e   : > { %v1617_v6 = vadd.f32 %v1616_v4, %v1481_v58  ;;  %v3227_v7 = vpop.f32.mrb[5].mxu1  ;;  %v3233_v21 = vpop.f32.mrb[9].mxu0  ;;  %v1663_v10 = vadd.f32 %v1662_v5, %v1481_v58 }
 0x31f   : > { %v1619_v22 = vpop.f32.mrb[6].mxu1  ;;  %v1665_v40 = vpop.f32.mrb[10].mxu0 }
 0x320   : > { %v3228_v8 = vpop.f32.mrb[7].mxu1  ;;  %v3234_v9 = vpop.f32.mrb[11].mxu0  ;;  %v1858_v43 = vsel %vm1483_vm3, %v1617_v6, -inf  ;;  %v1861_v12 = vsel %vm1483_vm3, %v1663_v10, -inf }
 0x321   : > { %1859 = vmax.xlane.f32.xlu0 %v1858_v43 }
 0x325   : > { %v1708_v13 = vpop.f32.mrb[8].mxu1  ;;  %1862 = vmax.xlane.f32.xlu0 %v1861_v12  ;;  %v1754_v23 = vpop.f32.mrb[12].mxu0 }
 0x326   : > { %v1709_v27 = vadd.f32 %v1708_v13, %v1482_v11  ;;  %v1755_v28 = vadd.f32 %v1754_v23, %v1482_v11  ;;  %v3239_v30 = vpop.f32.mrb[9].mxu1  ;;  %v3245_v31 = vpop.f32.mrb[13].mxu0 }
 0x327   : > { %v1711_v32 = vpop.f32.mrb[10].mxu1  ;;  %v1757_v35 = vpop.f32.mrb[14].mxu0 }
 0x328   : > { %v3240_v36 = vpop.f32.mrb[11].mxu1  ;;  %v3246_v37 = vpop.f32.mrb[15].mxu0  ;;  %v1864_v39 = vsel %vm1483_vm3, %v1709_v27, -inf  ;;  %v1867_v41 = vsel %vm1483_vm3, %v1755_v28, -inf }
 0x329   : > { %1865 = vmax.xlane.f32.xlu1 %v1864_v39  ;;  %1868 = vmax.xlane.f32.xlu0 %v1867_v41 }
 0x32d   : > { %v1800_v45 = vpop.f32.mrb[12].mxu1  ;;  %v1846_v46 = vpop.f32.mrb[16].mxu0 }
 0x32e   : > { %v4004_v47 = vadd.f32 %v1800_v45, %v1482_v11  ;;  %v4006_v48 = vadd.f32 %v1846_v46, %v1482_v11  ;;  %v3251_v49 = vpop.f32.mrb[13].mxu1  ;;  %v3257_v50 = vpop.f32.mrb[17].mxu0 }
 0x32f   : > { %v1803_v51 = vpop.f32.mrb[14].mxu1  ;;  %v1849_v52 = vpop.f32.mrb[18].mxu0 }
 0x330   : > { %v3252_v42 = vpop.f32.mrb[15].mxu1  ;;  %v3258_v53 = vpop.f32.mrb[19].mxu0  ;;  %v1870_v54 = vsel %vm1483_vm3, %v4004_v47, -inf  ;;  %v1873_v55 = vsel %vm1483_vm3, %v4006_v48, -inf }
 0x331   : > { %1871 = vmax.xlane.f32.xlu1 %v1870_v54  ;;  %1874 = vmax.xlane.f32.xlu0 %v1873_v55 }
 0x342   : > { %1185 = vrot.lane.b32.xlu1 %v3813_v17, %s3597_s20 }
 0x346   : > { %1189 = vrot.lane.b32.xlu1 %v3810_v16, %s3597_s20 }
 0x347   : > { %1181 = vrot.lane.b32.xlu0 %v3808_v15, %s3597_s20 }
 0x34a   : > { %1179 = vrot.lane.b32.xlu1 %v3803_v14, %s3597_s20 }
 0x3a6   : > { %v1854_v56 = vpop.xlane.xlu0 %1853  ;;  %v1857_v57 = vpop.xlane.xlu1 %1856 }
 0x3a7   : > { %v1876_v58 = vsub.f32 %v3992_v61, %v1854_v56  ;;  %v1877_v59 = vsub.f32 %v3994_v62, %v1857_v57 }
 0x3a9   : > { %v1884_v60 = vmul.f32 1.442695, %v1876_v58  ;;  %v1886_v63 = vmul.f32 1.442695, %v1877_v59 }
 0x3ab   : > { %3427 = vpow2.f32 %v1884_v60 }
 0x3ac   : > { %3429 = vpow2.f32 %v1886_v63 }
 0x3ae   : > { %v1860_v17 = vpop.xlane.xlu0 %1859 }
 0x3af   : > { %v1878_v0 = vsub.f32 %v1617_v6, %v1860_v17 }
 0x3b1   : > { %v1888_v16 = vmul.f32 1.442695, %v1878_v0 }
 0x3b2   : > { %v1863_v33 = vpop.xlane.xlu0 %1862 }
 0x3b3   : > { %3431 = vpow2.f32 %v1888_v16  ;;  %v1879_v15 = vsub.f32 %v1663_v10, %v1863_v33 }
 0x3b5   : > { %v4022_v34 = vpop.eup %3427  ;;  %v1890_v14 = vmul.f32 1.442695, %v1879_v15 }
 0x3b6   : > { %v4024_v24 = vpop.eup %3429  ;;  %v1866_v26 = vpop.xlane.xlu1 %1865  ;;  %v1900_v61 = vsel %vm1483_vm3, %v4022_v34, 0.0 }
 0x3b7   : > { %v1869_v1 = vpop.xlane.xlu0 %1868  ;;  %3433 = vpow2.f32 %v1890_v14  ;;  %v1880_v62 = vsub.f32 %v1709_v27, %v1866_v26  ;;  %1901 = vadd.xlane.f32.xlu1 %v1900_v61  ;;  %v1903_v4 = vsel %vm1483_vm3, %v4024_v24, 0.0 }
 0x3b8   : > { %v1881_v2 = vsub.f32 %v1755_v28, %v1869_v1  ;;  %1904 = vadd.xlane.f32.xlu0 %v1903_v4 }
 0x3b9   : > { %v1892_v5 = vmul.f32 1.442695, %v1880_v62 }
 0x3ba   : > { %v1894_v6 = vmul.f32 1.442695, %v1881_v2 }
 0x3bb   : > { %3435 = vpow2.f32 %v1892_v5 }
 0x3bc   : > { %3437 = vpow2.f32 %v1894_v6 }
 0x3bd   : > { %v4030_v7 = vpop.eup %3431 }
 0x3be   : > { %v4032_v21 = vpop.xlane.xlu1 %1871  ;;  %v1906_v22 = vsel %vm1483_vm3, %v4030_v7, 0.0  ;;  %v4036_v40 = vpop.xlane.xlu0 %1874 }
 0x3bf   : > { %1907 = vadd.xlane.f32.xlu0 %v1906_v22  ;;  %v1883_v6 = vsub.f32 %v4006_v48, %v4036_v40 }
 0x3c1   : > { %v4038_v10 = vpop.eup %3433  ;;  %v1898_v22 = vmul.f32 1.442695, %v1883_v6 }
 0x3c2   : > { %v1186_v8 = vpop.permute.xlu1 %1185  ;;  %v1909_v9 = vsel %vm1483_vm3, %v4038_v10, 0.0  ;;  %v1182_v13 = vpop.permute.xlu0 %1181 }
 0x3c3   : > { %1910 = vadd.xlane.f32.xlu1 %v1909_v9  ;;  %v1201_v11 = vcombine.low %v1178_v44, %v1186_v8  ;;  %v1202_v12 = vcombine.high %v1178_v44, %v1186_v8  ;;  %3439 = vpow2.f32 %v1898_v22 }
 0x3c5   : > { %v4042_v43 = vpop.eup %3435  ;;  %v1209_v32 = vrot.slane %v1201_v11, %v3832_v29  ;;  %v1216_v35 = vrot.slane %v1202_v12, %v3832_v29 }
 0x3c6   : > { %v1190_v23 = vpop.permute.xlu1 %1189  ;;  %v1912_v27 = vsel %vm1483_vm3, %v4042_v43, 0.0  ;;  %v4046_v28 = vpop.eup %3437 }
 0x3c7   : > { %v1217_v30 = vcombine.low %v1182_v13, %v1190_v23  ;;  %v1218_v31 = vcombine.high %v1182_v13, %v1190_v23  ;;  %1913 = vadd.xlane.f32.xlu0 %v1912_v27  ;;  %v1915_v39 = vsel %vm1483_vm3, %v4046_v28, 0.0 }
 0x3c9   : > { %v1225_v36 = vrot.slane %v1217_v30, %v3832_v29  ;;  %v1232_v37 = vrot.slane %v1218_v31, %v3832_v29 }
 0x3ca   : > { %v1180_v48 = vpop.permute.xlu1 %1179 }
 0x3cb   : > { %v1233_v41 = vcombine.low %v1209_v32, %v1225_v36  ;;  %v1234_v45 = vcombine.high %v1209_v32, %v1225_v36  ;;  %v1249_v46 = vcombine.low %v1216_v35, %v1232_v37  ;;  %v1250_v49 = vcombine.high %v1216_v35, %v1232_v37  ;;  %1916 = vadd.xlane.f32.xlu0 %v1915_v39 }
 0x3cd   : > { %v1241_v50 = vrot.slane %v1233_v41, %v3844_v38  ;;  %v1248_v51 = vrot.slane %v1234_v45, %v3844_v38  ;;  %v1257_v52 = vrot.slane %v1249_v46, %v3844_v38  ;;  %v1264_v42 = vrot.slane %v1250_v49, %v3844_v38  ;;  %v4080_v9 = vpop.eup %3439 }
 0x3ce   : > { %v1921_v11 = vsel %vm1483_vm3, %v4080_v9, 0.0 }
 0x3cf   : > { %v1337_v53 = vcombine.low %v1241_v50, %v1248_v51  ;;  %v3112_v54 = vcombine.high %v1241_v50, %v1248_v51  ;;  %v1353_v55 = vcombine.low %v1257_v52, %v1264_v42  ;;  %v3113_v44 = vcombine.high %v1257_v52, %v1264_v42 }
 0x3d1   : > { %v1344_v56 = vrot.slane %v1337_v53, %v3832_v29  ;;  %v1352_v57 = vrot.slane %v3112_v54, %v3832_v29  ;;  %v1360_v58 = vrot.slane %v1353_v55, %v3832_v29  ;;  %v1368_v59 = vrot.slane %v3113_v44, %v3832_v29 }
 0x3d3   : > { %v1369_v60 = vcombine.low %v1344_v56, %v1352_v57  ;;  %v1385_v63 = vcombine.low %v1360_v58, %v1368_v59  ;;  %v1370_v17 = vcombine.high %v1344_v56, %v1352_v57  ;;  %v1386_v0 = vcombine.high %v1360_v58, %v1368_v59 }
 0x3d4   : > { %1187 = vrot.lane.b32.xlu1 %v3821_v19, %s3597_s20 }
 0x3d5   : > { %v1377_v16 = vrot.slane %v1369_v60, %v3844_v38  ;;  %v1393_v33 = vrot.slane %v1385_v63, %v3844_v38  ;;  %v1384_v15 = vrot.slane %v1370_v17, %v3844_v38  ;;  %v1400_v14 = vrot.slane %v1386_v0, %v3844_v38 }
 0x3d7   : > { %v1401_v26 = vcombine.low %v1377_v16, %v1393_v33  ;;  %v1402_v1 = vcombine.high %v1377_v16, %v1393_v33  ;;  %v1403_v61 = vcombine.low %v1384_v15, %v1400_v14  ;;  %v1404_v62 = vcombine.high %v1384_v15, %v1400_v14 }
 0x3d8   : > { %1191 = vrot.lane.b32.xlu1 %v3823_v20, %s3597_s20  ;;  %v1882_v20 = vsub.f32 %v4004_v47, %v4032_v21 }
 0x3d9   : > { %v1473_v2 = vpack.c.bf16 %v1401_v26, %v1401_v26  ;;  %v1474_v4 = vpack.c.bf16 %v1402_v1, %v1402_v1  ;;  %v1475_v31 = vpack.c.bf16 %v1403_v61, %v1403_v61  ;;  %v1476_v35 = vpack.c.bf16 %v1404_v62, %v1404_v62 }
 0x3da   : > { %v1896_v8 = vmul.f32 1.442695, %v1882_v20 }
 0x3db   : > { %v1953_v19 = vsel %vm1951_vm4, %v1473_v2, 0  ;;  %v1999_v5 = vsel %vm1951_vm4, %v1474_v4, 0  ;;  %v2045_v39 = vsel %vm1951_vm4, %v1475_v31, 0  ;;  %v2091_v45 = vsel %vm1951_vm4, %v1476_v35, 0 }
 0x3dc   : > { %3260 = vmatpush3.bf16.msra.mxu1 %v1953_v19  ;;  %3266 = vmatpush3.bf16.msra.mxu0 %v1999_v5  ;;  %3441 = vpow2.f32 %v1896_v8 }
 0x3dd   : > { %3271 = vmatprep.subr.bf16.mxu1 %v3591_v3  ;;  %3277 = vmatprep.subr.bf16.mxu0 %v3591_v3 }
 0x3e1   : > { %1183 = vrot.lane.b32.xlu0 %v3817_v18, %s3597_s20 }
 0x3e6   : > { %v4084_v12 = vpop.eup %3441 }
 0x3e7   : > { %v1918_v18 = vsel %vm1483_vm3, %v4084_v12, 0.0 }
 0x3fc   : > { %1922 = vadd.xlane.f32.xlu1 %v1921_v11 }
 0x400   : > { %1919 = vadd.xlane.f32.xlu0 %v1918_v18 }
 0x444   : > { %v1902_v40 = vpop.xlane.xlu1 %1901 }
 0x445   : > { %3443 = vrcp.f32 %v1902_v40  ;;  %v1905_v47 = vpop.xlane.xlu0 %1904 }
 0x446   : > { %3445 = vrcp.f32 %v1905_v47 }
 0x44c   : > { %v1908_v21 = vpop.xlane.xlu0 %1907 }
 0x44d   : > { %3447 = vrcp.f32 %v1908_v21 }
 0x44f   : > { %v3444_v13 = vpop.eup %3443 }
 0x450   : > { %v3446_v23 = vpop.eup %3445  ;;  %v1932_v27 = vmul.f32 %v3444_v13, %v4022_v34  ;;  %v1911_v30 = vpop.xlane.xlu1 %1910 }
 0x451   : > { %v1933_v32 = vmul.f32 %v3446_v23, %v4024_v24  ;;  %3449 = vrcp.f32 %v1911_v30 }
 0x452   : > { %v1940_v36 = vpack.c.bf16 %v1932_v27, %v1932_v27 }
 0x453   : > { %v1941_v37 = vpack.c.bf16 %v1933_v32, %v1933_v32 }
 0x454   : > { %3262 = vmatmul.mubr.msk.bf16.vlgmr.msra.gmra.mrb[16].mxu1 %vm1483_vm3, %v1940_v36  ;;  %v1914_v41 = vpop.xlane.xlu0 %1913  ;;  %v1188_v46 = vpop.permute.xlu1 %1187 }
 0x455   : > { %3268 = vmatmul.mubr.msk.bf16.vlgmr.msra.gmra.mrb[20].mxu0 %vm1483_vm3, %v1941_v37  ;;  %3272 = vmatpush3.bf16.msra.mxu1 %v2045_v39  ;;  %v1269_v52 = vcombine.low %v1180_v48, %v1188_v46  ;;  %v1270_v42 = vcombine.high %v1180_v48, %v1188_v46  ;;  %3451 = vrcp.f32 %v1914_v41 }
 0x456   : > { %3278 = vmatpush3.bf16.msra.mxu0 %v2091_v45  ;;  %3273 = vmatprep.mubr.msk.bf16.mxu1 %vm3592_vm1, %v3591_v3 }
 0x457   : > { %v3448_v34 = vpop.eup %3447  ;;  %3279 = vmatprep.mubr.msk.bf16.mxu0 %vm3592_vm1, %v3591_v3  ;;  %3283 = vmatprep.subr.bf16.mxu1 %v3591_v3  ;;  %v1284_v58 = vrot.slane %v1270_v42, %v3832_v29 }
 0x458   : > { %v1934_v24 = vmul.f32 %v3448_v34, %v4030_v7  ;;  %v1917_v49 = vpop.xlane.xlu0 %1916  ;;  %3289 = vmatprep.subr.bf16.mxu0 %v3591_v3  ;;  %v1192_v54 = vpop.permute.xlu1 %1191  ;;  %v1277_v7 = vrot.slane %v1269_v52, %v3832_v29 }
 0x459   : > { %3453 = vrcp.f32 %v1917_v49 }
 0x45a   : > { %v1942_v50 = vpack.c.bf16 %v1934_v24, %v1934_v24 }
 0x45b   : > { %v3450_v51 = vpop.eup %3449 }
 0x45c   : > { %v1935_v53 = vmul.f32 %v3450_v51, %v4038_v10  ;;  %3274 = vmatmul.mubr.msk.bf16.vlgmr.msra.gmra.mrb[20].mxu1 %vm1483_vm3, %v1942_v50  ;;  %v1184_v55 = vpop.permute.xlu0 %1183 }
 0x45d   : > { %v1285_v44 = vcombine.low %v1184_v55, %v1192_v54  ;;  %v1286_v56 = vcombine.high %v1184_v55, %v1192_v54  ;;  %3285 = vmatprep.mubr.msk.bf16.mxu1 %vm3592_vm1, %v3591_v3 }
 0x45e   : > { %v1943_v57 = vpack.c.bf16 %v1935_v53, %v1935_v53 }
 0x45f   : > { %v1293_v59 = vrot.slane %v1285_v44, %v3832_v29  ;;  %v1300_v60 = vrot.slane %v1286_v56, %v3832_v29  ;;  %v3452_v11 = vpop.eup %3451 }
 0x460   : > { %3280 = vmatmul.mubr.msk.bf16.vlgmr.msra.gmra.mrb[24].mxu0 %vm1483_vm3, %v1943_v57  ;;  %v1936_v31 = vmul.f32 %v3452_v11, %v4042_v43 }
 0x461   : > { %v1301_v10 = vcombine.low %v1277_v7, %v1293_v59  ;;  %v1302_v63 = vcombine.high %v1277_v7, %v1293_v59  ;;  %v1317_v17 = vcombine.low %v1284_v58, %v1300_v60  ;;  %v1318_v0 = vcombine.high %v1284_v58, %v1300_v60  ;;  %3291 = vmatprep.mubr.msk.bf16.mxu0 %vm3592_vm1, %v3591_v3 }
 0x462   : > { %v1944_v46 = vpack.c.bf16 %v1936_v31, %v1936_v31 }
 0x463   : > { %v1309_v16 = vrot.slane %v1301_v10, %v3844_v38  ;;  %v1316_v33 = vrot.slane %v1302_v63, %v3844_v38  ;;  %v1325_v15 = vrot.slane %v1317_v17, %v3844_v38  ;;  %v1332_v14 = vrot.slane %v1318_v0, %v3844_v38  ;;  %v3454_v21 = vpop.eup %3453 }
 0x464   : > { %v1937_v32 = vmul.f32 %v3454_v21, %v4046_v28 }
 0x465   : > { %v1405_v26 = vcombine.low %v1309_v16, %v1316_v33  ;;  %v3114_v1 = vcombine.high %v1309_v16, %v1316_v33  ;;  %v1421_v61 = vcombine.low %v1325_v15, %v1332_v14  ;;  %v3115_v62 = vcombine.high %v1325_v15, %v1332_v14 }
 0x466   : > { %v1945_v34 = vpack.c.bf16 %v1937_v32, %v1937_v32 }
 0x467   : > { %v1412_v2 = vrot.slane %v1405_v26, %v3832_v29  ;;  %v1420_v4 = vrot.slane %v3114_v1, %v3832_v29  ;;  %v1428_v19 = vrot.slane %v1421_v61, %v3832_v29  ;;  %v1436_v5 = vrot.slane %v3115_v62, %v3832_v29 }
 0x469   : > { %v1437_v6 = vcombine.low %v1412_v2, %v1420_v4  ;;  %v1453_v20 = vcombine.low %v1428_v19, %v1436_v5  ;;  %v1438_v22 = vcombine.high %v1412_v2, %v1420_v4  ;;  %v1454_v8 = vcombine.high %v1428_v19, %v1436_v5 }
 0x46b   : > { %v1445_v18 = vrot.slane %v1437_v6, %v3844_v38  ;;  %v1461_v48 = vrot.slane %v1453_v20, %v3844_v38  ;;  %v1452_v40 = vrot.slane %v1438_v22, %v3844_v38  ;;  %v1468_v47 = vrot.slane %v1454_v8, %v3844_v38 }
 0x46d   : > { %v1469_v13 = vcombine.low %v1445_v18, %v1461_v48  ;;  %v1470_v23 = vcombine.high %v1445_v18, %v1461_v48  ;;  %v1471_v27 = vcombine.low %v1452_v40, %v1468_v47  ;;  %v1472_v30 = vcombine.high %v1452_v40, %v1468_v47 }
 0x46f   : > { %v1477_v35 = vpack.c.bf16 %v1469_v13, %v1469_v13  ;;  %v1478_v36 = vpack.c.bf16 %v1470_v23, %v1470_v23  ;;  %v1479_v41 = vpack.c.bf16 %v1471_v27, %v1471_v27  ;;  %v1480_v45 = vpack.c.bf16 %v1472_v30, %v1472_v30 }
 0x471   : > { %v2137_v37 = vsel %vm1951_vm4, %v1477_v35, 0  ;;  %v2183_v39 = vsel %vm1951_vm4, %v1478_v36, 0  ;;  %v2229_v43 = vsel %vm1951_vm4, %v1479_v41, 0  ;;  %v2275_v28 = vsel %vm1951_vm4, %v1480_v45, 0 }
 0x472   : > { %3284 = vmatpush3.bf16.msra.mxu1 %v2137_v37  ;;  %3290 = vmatpush3.bf16.msra.mxu0 %v2183_v39 }
 0x473   : > { %3295 = vmatprep.subr.bf16.mxu1 %v3591_v3  ;;  %3301 = vmatprep.subr.bf16.mxu0 %v3591_v3 }
 0x475   : > { %3286 = vmatmul.mubr.msk.bf16.vlgmr.msra.gmra.mrb[24].mxu1 %vm1483_vm3, %v1944_v46  ;;  %3292 = vmatmul.mubr.msk.bf16.vlgmr.msra.gmra.mrb[28].mxu0 %vm1483_vm3, %v1945_v34 }
 0x476   : > { %3296 = vmatpush3.bf16.msra.mxu1 %v2229_v43  ;;  %3302 = vmatpush3.bf16.msra.mxu0 %v2275_v28 }
 0x477   : > { %3303 = vmatprep.mubr.msk.bf16.mxu0 %vm3592_vm1, %v3591_v3  ;;  %3297 = vmatprep.mubr.msk.bf16.mxu1 %vm3592_vm1, %v3591_v3 }
 0x478   : > { %3307 = vmatprep.subr.bf16.mxu1 %v3591_v3  ;;  %3315 = vmatprep.subr.bf16.mxu0 %v3591_v3 }
 0x489   : > { %v1923_v24 = vpop.xlane.xlu1 %1922 }
 0x48a   : > { %3455 = vrcp.f32 %v1923_v24 }
 0x48d   : > { %v1920_v49 = vpop.xlane.xlu0 %1919 }
 0x48e   : > { %3457 = vrcp.f32 %v1920_v49 }
 0x494   : > { %v3456_v50 = vpop.eup %3455 }
 0x495   : > { %v1939_v51 = vmul.f32 %v3456_v50, %v4080_v9 }
 0x497   : > { %v1947_v52 = vpack.c.bf16 %v1939_v51, %v1939_v51 }
 0x498   : > { %v3458_v42 = vpop.eup %3457 }
 0x499   : > { %v1938_v53 = vmul.f32 %v3458_v42, %v4084_v12  ;;  %3304 = vmatmul.mubr.msk.bf16.vlgmr.msra.gmra.mrb[32].mxu0 %vm1483_vm3, %v1947_v52 }
 0x49a   : > { %3319 = vmatprep.mubr.msk.bf16.mxu0 %vm3592_vm1, %v3591_v3 }
 0x49b   : > { %v1946_v54 = vpack.c.bf16 %v1938_v53, %v1938_v53 }
 0x49d   : > { %3298 = vmatmul.mubr.msk.bf16.vlgmr.msra.gmra.mrb[28].mxu1 %vm1483_vm3, %v1946_v54 }
 0x49e   : > { %3311 = vmatprep.mubr.msk.bf16.mxu1 %vm3592_vm1, %v3591_v3 }
 0x527   : > { %v1989_v55 = vpop.f32.mrb[16].mxu1 }
 0x528   : > { %v2035_v44 = vpop.f32.mrb[20].mxu0  ;;  %v3263_v56 = vpop.f32.mrb[17].mxu1 }
 0x529   : > { %v3269_v57 = vpop.f32.mrb[21].mxu0  ;;  %v1992_v9 = vpop.f32.mrb[18].mxu1 }
 0x52a   : > { %v2038_v7 = vpop.f32.mrb[22].mxu0  ;;  %v3264_v58 = vpop.f32.mrb[19].mxu1 }
 0x52b   : > { %v3270_v59 = vpop.f32.mrb[23].mxu0 }
 0x52f   : > { %v2081_v12 = vpop.f32.mrb[20].mxu1 }
 0x530   : > { %v2317_v60 = vcombine.low %v1989_v55, %v2081_v12  ;;  %v2318_v10 = vcombine.high %v1989_v55, %v2081_v12  ;;  %v3275_v63 = vpop.f32.mrb[21].mxu1 }
 0x531   : > { %v2084_v17 = vpop.f32.mrb[22].mxu1 }
 0x532   : > { %v3276_v0 = vpop.f32.mrb[23].mxu1  ;;  %v2325_v1 = vrot.slane %v2317_v60, %v3832_v29  ;;  %v2332_v61 = vrot.slane %v2318_v10, %v3832_v29 }
 0x533   : > { %v2127_v16 = vpop.f32.mrb[24].mxu0 }
 0x534   : > { %v2333_v33 = vcombine.low %v2035_v44, %v2127_v16  ;;  %v2334_v15 = vcombine.high %v2035_v44, %v2127_v16  ;;  %v3281_v14 = vpop.f32.mrb[25].mxu0 }
 0x535   : > { %v2130_v26 = vpop.f32.mrb[26].mxu0 }
 0x536   : > { %v2341_v62 = vrot.slane %v2333_v33, %v3832_v29  ;;  %v2348_v2 = vrot.slane %v2334_v15, %v3832_v29  ;;  %v3282_v4 = vpop.f32.mrb[27].mxu0 }
 0x538   : > { %v2349_v19 = vcombine.low %v2325_v1, %v2341_v62  ;;  %v2350_v5 = vcombine.high %v2325_v1, %v2341_v62  ;;  %v2365_v6 = vcombine.low %v2332_v61, %v2348_v2  ;;  %v2366_v20 = vcombine.high %v2332_v61, %v2348_v2 }
 0x53a   : > { %v2357_v22 = vrot.slane %v2349_v19, %v3844_v38  ;;  %v2364_v8 = vrot.slane %v2350_v5, %v3844_v38  ;;  %v2373_v11 = vrot.slane %v2365_v6, %v3844_v38  ;;  %v2380_v18 = vrot.slane %v2366_v20, %v3844_v38 }
 0x53c   : > { %v2453_v48 = vcombine.low %v2357_v22, %v2364_v8  ;;  %v3132_v40 = vcombine.high %v2357_v22, %v2364_v8  ;;  %v2469_v47 = vcombine.low %v2373_v11, %v2380_v18  ;;  %v3133_v21 = vcombine.high %v2373_v11, %v2380_v18  ;;  %v3419_v22 = vld [vmem:[%s3765_s15] sm:$0xff]  }
 0x53d   : > { %3308 = vmatpush3.bf16.msra.mxu1 %v3419_v22  ;;  %v3421_v22 = vld [vmem:[%s3770_s27] sm:$0xff]  }
 0x53e   : > { %v2460_v13 = vrot.slane %v2453_v48, %v3832_v29  ;;  %v2468_v23 = vrot.slane %v3132_v40, %v3832_v29  ;;  %v2476_v27 = vrot.slane %v2469_v47, %v3832_v29  ;;  %v2484_v30 = vrot.slane %v3133_v21, %v3832_v29  ;;  %3309 = vmatprep.subr.bf16.mxu1 %v3591_v3 }
 0x53f   : > { %3316 = vmatpush3.bf16.msra.mxu0 %v3421_v22 }
 0x540   : > { %v2486_v31 = vcombine.high %v2460_v13, %v2468_v23  ;;  %v2502_v32 = vcombine.high %v2476_v27, %v2484_v30  ;;  %v2485_v35 = vcombine.low %v2460_v13, %v2468_v23  ;;  %v2501_v36 = vcombine.low %v2476_v27, %v2484_v30  ;;  %v3420_v23 = vld [vmem:[%s3765_s15 + $0x8] sm:$0xff]   ;;  %s3601_s15 = smov 8   ;;  %3317 = vmatprep.subr.bf16.mxu0 %v3591_v3 }
 0x541   : > { %3310 = vmatpush3.bf16.msra.mxu1 %v3420_v23 }
 0x542   : > { %v4161_v37 = vrot.slane %v2486_v31, %v3844_v38  ;;  %v4164_v39 = vrot.slane %v2502_v32, %v3844_v38  ;;  %v4167_v41 = vrot.slane %v2485_v35, %v3844_v38  ;;  %v4170_v45 = vrot.slane %v2501_v36, %v3844_v38  ;;  %3323 = vmatprep.subr.bf16.mxu1 %v3591_v3 }
 0x544   : > { %v2519_v46 = vcombine.low %v4161_v37, %v4164_v39  ;;  %v2517_v34 = vcombine.low %v4167_v41, %v4170_v45  ;;  %v2518_v43 = vcombine.high %v4167_v41, %v4170_v45  ;;  %v2520_v28 = vcombine.high %v4161_v37, %v4164_v39  ;;  %v4211_v45 = vld [vmem:[%s3785_s23] sm:$0x3f] }
 0x545   : > { %v2628_v41 = vsub.s32 0, %v3828_v25 }
 0x548   : > { %v2173_v24 = vpop.f32.mrb[24].mxu1  ;;  %v2219_v49 = vpop.f32.mrb[28].mxu0 }
 0x549   : > { %v3287_v50 = vpop.f32.mrb[25].mxu1  ;;  %v3293_v51 = vpop.f32.mrb[29].mxu0 }
 0x54a   : > { %v2176_v52 = vpop.f32.mrb[26].mxu1  ;;  %v2222_v42 = vpop.f32.mrb[30].mxu0 }
 0x54b   : > { %v3288_v53 = vpop.f32.mrb[27].mxu1  ;;  %v3294_v54 = vpop.f32.mrb[31].mxu0 }
 0x56c   : > { %v2311_v55 = vpop.f32.mrb[32].mxu0 }
 0x56d   : > { %v2401_v44 = vcombine.low %v2219_v49, %v2311_v55  ;;  %v2402_v56 = vcombine.high %v2219_v49, %v2311_v55  ;;  %v3305_v57 = vpop.f32.mrb[33].mxu0 }
 0x56e   : > { %v2314_v9 = vpop.f32.mrb[34].mxu0 }
 0x56f   : > { %v3306_v7 = vpop.f32.mrb[35].mxu0  ;;  %v2409_v63 = vrot.slane %v2401_v44, %v3832_v29  ;;  %v2416_v17 = vrot.slane %v2402_v56, %v3832_v29 }
 0x570   : > { %v2265_v58 = vpop.f32.mrb[28].mxu1 }
 0x571   : > { %v2385_v59 = vcombine.low %v2173_v24, %v2265_v58  ;;  %v2386_v12 = vcombine.high %v2173_v24, %v2265_v58  ;;  %v3299_v60 = vpop.f32.mrb[29].mxu1 }
 0x572   : > { %v2268_v10 = vpop.f32.mrb[30].mxu1 }
 0x573   : > { %v2393_v0 = vrot.slane %v2385_v59, %v3832_v29  ;;  %v2400_v16 = vrot.slane %v2386_v12, %v3832_v29  ;;  %v3300_v33 = vpop.f32.mrb[31].mxu1 }
 0x574   : > { %v3468_v33 = vld [vmem:[#allocation2 + $0x8] sm:$0xff] }
 0x575   : > { %v2417_v15 = vcombine.low %v2393_v0, %v2409_v63  ;;  %v2418_v14 = vcombine.high %v2393_v0, %v2409_v63  ;;  %v2433_v26 = vcombine.low %v2400_v16, %v2416_v17  ;;  %v2434_v1 = vcombine.high %v2400_v16, %v2416_v17  ;;  %v3467_v17 = vld [vmem:[#allocation2] sm:$0xff] }
 0x577   : > { %v2425_v61 = vrot.slane %v2417_v15, %v3844_v38  ;;  %v2432_v62 = vrot.slane %v2418_v14, %v3844_v38  ;;  %v2441_v2 = vrot.slane %v2433_v26, %v3844_v38  ;;  %v2448_v4 = vrot.slane %v2434_v1, %v3844_v38 }
 0x579   : > { %v2521_v19 = vcombine.low %v2425_v61, %v2432_v62  ;;  %v3134_v5 = vcombine.high %v2425_v61, %v2432_v62  ;;  %v2537_v6 = vcombine.low %v2441_v2, %v2448_v4  ;;  %v3135_v20 = vcombine.high %v2441_v2, %v2448_v4 }
 0x57b   : > { %v2528_v8 = vrot.slane %v2521_v19, %v3832_v29  ;;  %v2536_v11 = vrot.slane %v3134_v5, %v3832_v29  ;;  %v2544_v18 = vrot.slane %v2537_v6, %v3832_v29  ;;  %v2552_v48 = vrot.slane %v3135_v20, %v3832_v29 }
 0x57d   : > { %v2554_v40 = vcombine.high %v2528_v8, %v2536_v11  ;;  %v2570_v47 = vcombine.high %v2544_v18, %v2552_v48  ;;  %v2553_v21 = vcombine.low %v2528_v8, %v2536_v11  ;;  %v2569_v13 = vcombine.low %v2544_v18, %v2552_v48  ;;  %v3422_v8 = vld [vmem:[%s3770_s27 + $0x8] sm:$0xff]   ;;  %v3423_v11 = vld [vmem:[%s3775_s19] sm:$0xff]  }
 0x57e   : > { %3318 = vmatpush3.bf16.msra.mxu0 %v3422_v8  ;;  %v3424_v18 = vld [vmem:[%s3775_s19 + $0x8] sm:$0xff]   ;;  %v2908_v8 = vsub.s32 4, %v3828_v25 }
 0x57f   : > { %v2568_v27 = vrot.slane %v2554_v40, %v3844_v38  ;;  %v2584_v30 = vrot.slane %v2570_v47, %v3844_v38  ;;  %v2561_v31 = vrot.slane %v2553_v21, %v3844_v38  ;;  %v2577_v32 = vrot.slane %v2569_v13, %v3844_v38 }
 0x581   : > { %v2587_v35 = vcombine.low %v2568_v27, %v2584_v30  ;;  %v2586_v36 = vcombine.high %v2561_v31, %v2577_v32  ;;  %v2585_v29 = vcombine.low %v2561_v31, %v2577_v32  ;;  %v2588_v37 = vcombine.high %v2568_v27, %v2584_v30 }
 0x582   : > { %v2717_v27 = vsub.s32 1, %v3828_v25  ;;  %v2723_v31 = vsub.s32 2, %v3828_v25 }
 0x583   : > { %v3407_v39 = vpack.i.bf16 %v2587_v35, %v2519_v46  ;;  %v3402_v24 = vpack.i.bf16 %v2586_v36, %v2518_v43  ;;  %v3412_v49 = vpack.i.bf16 %v2588_v37, %v2520_v28 }
 0x584   : > { %v2718_v30 = vrot.slane %v4211_v45, %v2717_v27 }
 0x585   : > { %3408 = vrot.lane.b32.xlu1 %v3407_v39, %s3600_s22  ;;  %3403 = vrot.lane.b32.xlu0 %v3402_v24, %s3601_s15  ;;  %v2724_v39 = vrot.slane %v4211_v45, %v2723_v31 }
 0x589   : > { %3413 = vrot.lane.b32.xlu0 %v3412_v49, %s3602_s25 }
 0x5f7   : > { %v3409_v50 = vpop.permute.xlu1 %3408  ;;  %v3404_v51 = vpop.permute.xlu0 %3403 }
 0x5f8   : > { %v3406_v38 = vunpack.i.h.bf16 %v3404_v51  ;;  %v3405_v52 = vunpack.i.l.bf16 %v3404_v51  ;;  %v3411_v42 = vunpack.i.h.bf16 %v3409_v50  ;;  %v3410_v53 = vunpack.i.l.bf16 %v3409_v50 }
 0x5fa   : > { %v2613_v46 = vsel %vm1483_vm3, %v2517_v34, %v3405_v52  ;;  %v2614_v43 = vsel %vm1483_vm3, %v2585_v29, %v3406_v38  ;;  %v2629_v34 = vrot.slane %v4211_v45, %v2628_v41  ;;  %v3425_v38 = vld [vmem:[%s3775_s19 + $0x10] sm:$0xff]   ;;  %v3426_v52 = vld [vmem:[%s3775_s19 + $0x18] sm:$0xff]  }
 0x5fb   : > { %v3414_v28 = vpop.permute.xlu0 %3413  ;;  %v2616_v44 = vsel %vm2615_vm5, %v2613_v46, %v3410_v53  ;;  %v2617_v56 = vsel %vm2615_vm5, %v2614_v43, %v3411_v42  ;;  %v3139_v42 = vld [vmem:[%s488_s14] ss:$0 sm:$0xff] }
 0x5fc   : > { %v3416_v54 = vunpack.i.h.bf16 %v3414_v28  ;;  %v3415_v55 = vunpack.i.l.bf16 %v3414_v28 }
 0x5fe   : > { %v2619_v57 = vsel %vm2618_vm6, %v2616_v44, %v3415_v55  ;;  %v2620_v9 = vsel %vm2618_vm6, %v2617_v56, %v3416_v54 }
 0x5ff   : > { %v2621_v7 = vpack.c.bf16 %v2620_v9, %v2619_v57 }
 0x601   : > { %3312 = vmatmul.mubr.msk.bf16.vlgmr.msra.gmra.mrb[32].mxu1 %vm528_vm2, %v2621_v7 }
 0x602   : > { %3331 = vmatprep.mubr.msk.bf16.mxu1 %vm3592_vm1, %v3591_v3  ;;  %3324 = vmatpush3.bf16.msra.mxu1 %v3423_v11  ;;  %v2914_v11 = vsub.s32 5, %v3828_v25 }
 0x603   : > { %3325 = vmatprep.subr.bf16.mxu1 %v3591_v3 }
 0x606   : > { %3326 = vmatpush3.bf16.msra.mxu1 %v3424_v18  ;;  %v2909_v18 = vrot.slane %v4211_v45, %v2908_v8 }
 0x607   : > { %3327 = vmatprep.subr.bf16.mxu1 %v3591_v3 }
 0x60a   : > { %3328 = vmatpush3.bf16.msra.mxu1 %v3425_v38 }
 0x60b   : > { %3329 = vmatprep.subr.bf16.mxu1 %v3591_v3  ;;  %v2807_v3 = vsub.s32 3, %v3828_v25 }
 0x60d   : > { %v2808_v9 = vrot.slane %v4211_v45, %v2807_v3 }
 0x60e   : > { %3330 = vmatpush3.bf16.msra.mxu1 %v3426_v52 }
 0x6d4   : > { %v2679_v58 = vpop.f32.mrb[32].mxu1 }
 0x6d5   : > { %v2680_v59 = vadd.f32 %v2679_v58, %v2629_v34  ;;  %v3313_v12 = vpop.f32.mrb[33].mxu1 }
 0x6d6   : > { %v2682_v60 = vpop.f32.mrb[34].mxu1 }
 0x6d7   : > { %v2683_v10 = vadd.f32 %v2682_v60, %v2629_v34  ;;  %v3314_v63 = vpop.f32.mrb[35].mxu1  ;;  %v2686_v0 = vadd.f32 %v3467_v17, %v2680_v59 }
 0x6d9   : > { %v2688_v16 = vsel %vm528_vm2, %v2686_v0, 0.0  ;;  %v2687_v15 = vadd.f32 %v3468_v33, %v2683_v10 }
 0x6da   : > { %2689 = vadd.xlane.f32.xlu1 %v2688_v16 }
 0x6db   : > { %v2691_v14 = vsel %vm528_vm2, %v2687_v15, 0.0 }
 0x6dc   : > { %2692 = vadd.xlane.f32.xlu0 %v2691_v14 }
 0x767   : > { %v2690_v26 = vpop.xlane.xlu1 %2689 }
 0x768   : > { %v2695_v1 = vmul.f32 0.03125, %v2690_v26 }
 0x769   : > { %v2693_v61 = vpop.xlane.xlu0 %2692 }
 0x76a   : > { %v2697_v62 = vsub.f32 %v2686_v0, %v2695_v1  ;;  %v2696_v2 = vmul.f32 0.03125, %v2693_v61 }
 0x76c   : > { %v2698_v4 = vsub.f32 %v2687_v15, %v2696_v2  ;;  %v2699_v19 = vmul.f32 %v2697_v62, %v2697_v62 }
 0x76e   : > { %v2701_v5 = vsel %vm528_vm2, %v2699_v19, 0.0  ;;  %v2700_v6 = vmul.f32 %v2698_v4, %v2698_v4 }
 0x76f   : > { %2702 = vadd.xlane.f32.xlu0 %v2701_v5 }
 0x770   : > { %v2704_v20 = vsel %vm528_vm2, %v2700_v6, 0.0 }
 0x771   : > { %2705 = vadd.xlane.f32.xlu1 %v2704_v20 }
 0x7fc   : > { %v2703_v48 = vpop.xlane.xlu0 %2702 }
 0x7fd   : > { %v2707_v40 = vmul.f32 0.03125, %v2703_v48 }
 0x7fe   : > { %v2706_v47 = vpop.xlane.xlu1 %2705 }
 0x7ff   : > { %v2709_v21 = vadd.f32 1e-05, %v2707_v40  ;;  %v2708_v13 = vmul.f32 0.03125, %v2706_v47  ;;  %v2915_v40 = vrot.slane %v4211_v45, %v2914_v11 }
 0x801   : > { %3459 = vrsqrt.f32 %v2709_v21  ;;  %v2710_v23 = vadd.f32 1e-05, %v2708_v13 }
 0x803   : > { %3461 = vrsqrt.f32 %v2710_v23 }
 0x80b   : > { %v3460_v32 = vpop.eup %3459 }
 0x80c   : > { %v2713_v35 = vmul.f32 %v3460_v32, %v2697_v62 }
 0x80d   : > { %v3462_v36 = vpop.eup %3461 }
 0x80e   : > { %v2719_v29 = vmul.f32 %v2718_v30, %v2713_v35  ;;  %v2714_v37 = vmul.f32 %v3462_v36, %v2698_v4 }
 0x810   : > { %v2720_v24 = vmul.f32 %v2718_v30, %v2714_v37  ;;  %v2725_v49 = vadd.f32 %v2724_v39, %v2719_v29 }
 0x812   : > { %v2726_v50 = vadd.f32 %v2724_v39, %v2720_v24 }
 0x814   : > { %v2727_v51 = vpack.c.bf16 %v2726_v50, %v2725_v49 }
 0x816   : > { %3320 = vmatmul.mubr.msk.bf16.vlgmr.msra.gmra.mrb[36].mxu0 %vm528_vm2, %v2727_v51 }
 0x8e9   : > { %v2787_v53 = vpop.f32.mrb[36].mxu0 }
 0x8ea   : > { %v2788_v46 = vadd.f32 %v3139_v42, %v2787_v53  ;;  %v3321_v43 = vpop.f32.mrb[37].mxu0 }
 0x8eb   : > { %v2790_v28 = vpop.f32.mrb[38].mxu0 }
 0x8ec   : > { %v2791_v54 = vadd.f32 %v3139_v42, %v2790_v28  ;;  %v3322_v55 = vpop.f32.mrb[39].mxu0  ;;  %v2794_v44 = vmax.f32 %v2788_v46, 0.0 }
 0x8ee   : > { %v2795_v56 = vmax.f32 %v2791_v54, 0.0 }
 0x8f0   : > { %v2796_v57 = vpack.c.bf16 %v2795_v56, %v2794_v44 }
 0x8f2   : > { %3332 = vmatmul.mubr.msk.bf16.vlgmr.msra.gmra.mrb[36].mxu1 %vm2833_vm7, %v2796_v57 }
 0x9c5   : > { %v2871_v7 = vpop.f32.mrb[36].mxu1 }
 0x9c6   : > { %v2872_v41 = vadd.f32 %v2871_v7, %v2808_v9  ;;  %v3333_v34 = vpop.f32.mrb[37].mxu1 }
 0x9c7   : > { %v2874_v58 = vpop.f32.mrb[38].mxu1 }
 0x9c8   : > { %v2875_v59 = vadd.f32 %v2874_v58, %v2808_v9  ;;  %v3334_v12 = vpop.f32.mrb[39].mxu1  ;;  %v2878_v60 = vadd.f32 %v2872_v41, %v2725_v49 }
 0x9ca   : > { %v2880_v10 = vsel %vm528_vm2, %v2878_v60, 0.0  ;;  %v2879_v63 = vadd.f32 %v2875_v59, %v2726_v50 }
 0x9cb   : > { %2881 = vadd.xlane.f32.xlu0 %v2880_v10 }
 0x9cc   : > { %v2883_v17 = vsel %vm528_vm2, %v2879_v63, 0.0 }
 0x9cd   : > { %2884 = vadd.xlane.f32.xlu1 %v2883_v17 }
 0xa58   : > { %v2882_v0 = vpop.xlane.xlu0 %2881 }
 0xa59   : > { %v2886_v16 = vmul.f32 0.03125, %v2882_v0 }
 0xa5a   : > { %v2885_v33 = vpop.xlane.xlu1 %2884 }
 0xa5b   : > { %v2888_v15 = vsub.f32 %v2878_v60, %v2886_v16  ;;  %v2887_v14 = vmul.f32 0.03125, %v2885_v33 }
 0xa5d   : > { %v2889_v26 = vsub.f32 %v2879_v63, %v2887_v14  ;;  %v2890_v1 = vmul.f32 %v2888_v15, %v2888_v15 }
 0xa5f   : > { %v2892_v61 = vsel %vm528_vm2, %v2890_v1, 0.0  ;;  %v2891_v62 = vmul.f32 %v2889_v26, %v2889_v26 }
 0xa60   : > { %2893 = vadd.xlane.f32.xlu0 %v2892_v61 }
 0xa61   : > { %v2895_v2 = vsel %vm528_vm2, %v2891_v62, 0.0 }
 0xa62   : > { %2896 = vadd.xlane.f32.xlu1 %v2895_v2 }
 0xaed   : > { %v2894_v4 = vpop.xlane.xlu0 %2893 }
 0xaee   : > { %v2898_v19 = vmul.f32 0.03125, %v2894_v4 }
 0xaef   : > { %v2897_v5 = vpop.xlane.xlu1 %2896 }
 0xaf0   : > { %v2900_v6 = vadd.f32 1e-05, %v2898_v19  ;;  %v2899_v20 = vmul.f32 0.03125, %v2897_v5 }
 0xaf2   : > { %3463 = vrsqrt.f32 %v2900_v6  ;;  %v2901_v22 = vadd.f32 1e-05, %v2899_v20 }
 0xaf4   : > { %3465 = vrsqrt.f32 %v2901_v22 }
 0xafc   : > { %v3464_v48 = vpop.eup %3463 }
 0xafd   : > { %v2904_v47 = vmul.f32 %v3464_v48, %v2888_v15 }
 0xafe   : > { %v3466_v21 = vpop.eup %3465 }
 0xaff   : > { %v2910_v13 = vmul.f32 %v2909_v18, %v2904_v47  ;;  %v2905_v23 = vmul.f32 %v3466_v21, %v2889_v26  ;;  %2923 = sbr.rel (%p3148_p4) target bundleno = 2830 (0xb0e), region = 72 }
 0xb01   : > { %v2916_v27 = vadd.f32 %v2915_v40, %v2910_v13  ;;  %v2911_v30 = vmul.f32 %v2909_v18, %v2905_v23 }
 0xb03   : > { %2918 = vst.msk [vmem:[#allocation2] sm:$0xff] %vm528_vm2, %v2916_v27  ;;  %v2917_v31 = vadd.f32 %v2915_v40, %v2911_v30 }
 0xb05   : > { %2919 = vst.msk [vmem:[#allocation2 + $0x8] sm:$0xff] %vm528_vm2, %v2917_v31 }
 0xb0a   : > { %v2924_v25 = vld [vmem:[#allocation2] sm:$0xff] }
 0xb0b   : > { %2926 = vst.msk [vmem:[#allocation8] sm:$0xff] %vm528_vm2, %v2924_v25 }
 0xb0c   : > { %v2925_v32 = vld [vmem:[#allocation2 + $0x8] sm:$0xff] }
 0xb0d   : > { %2927 = vst.msk [vmem:[#allocation8 + $0x8] sm:$0xff] %vm528_vm2, %v2925_v32 }
 0xb0e PF: > { %s4316_s18 = sadd.s32 4294967295, %s3585_s11   ;;  %s3603_s17 = smov [#allocation8]  }
 0xb0f   : > { %p4255_p9 = scmp.eq.s32.totalorder %s4316_s18, 1  ;;  %s2937_s19 = sshll.u32 %s3603_s17, 4  ;;  %s2938_s19 = int_to_ptr.vmem [resolvable:$true] %s2937_s19 }
 0xb10   : > { %s3525_s21 = scalar_lea.vmem %s2938_s19, 256  ;;  %p3532_p13 = scmp.lt.s32.totalorder %s2938_s19, %s2938_s19 }
 0xb11   : > { %p3526_p10 = scmp.ne.s32.totalorder %s2938_s19, %s3525_s21  ;;  %p3533_p0 = scmp.lt.s32.totalorder %s3525_s21, %s3525_s21 }
 0xb13   : > { %p3527_p11 = pnand %p3526_p10, %p4255_p9  ;;  %p3534_p1 = por %p3533_p0, %p3532_p13 }
 0xb15   : > { %p3528_p12 = pneg %p3527_p11 }
 0xb17   : > { %p3535_p2 = pnand %p3534_p1, %p3528_p12 }
 0xb19   : > { %3538 = shalt.err (!%p3535_p2)
}
 0xb1a   : > { %s3539_s16 = scalar_lea.hbm %s4300_s9, 256 }
 0xb1b   : > { %p3540_p5 = scmp.ne.s32.totalorder %s4300_s9, %s3539_s16  ;;  %p3545_p8 = scmp.lt.u32.totalorder %s3539_s16, %s4300_s9 }
 0xb1d   : > { %p3541_p7 = pnand %p3540_p5, %p4255_p9 }
 0xb1f   : > { %p3542_p3 = pneg %p3541_p7 }
 0xb21   : > { %p3547_p6 = pnand %p3545_p8, %p3542_p3 }
 0xb23   : > { %3550 = shalt.err (!%p3547_p6)
}
 0xb24   : > { %s3604_s1 = smov 128  }
 0xb25   : > { %3344 = dma.vmem_to_hbm [thread:$0]  (%p4255_p9), %s2938_s19, 256, %s4300_s9, [#allocation5], %s3604_s1, %s3604_s1, %s3601_s15  }
 0xb26   : > { %3572 = dma.done.wait (%p4255_p9), [#allocation5], 256  }
 0xb27   : > { %3574 = vsyncadd (%p4255_p9), [#allocation5], 4294967040 }
 0xb28 PF: > { %s22_s11 = sadd.s32 1, %s3585_s11   ;;  %s4318_s30 = smov %s3581_s10 }
 0xb29   : > { %p19_p4 = scmp.ge.s32.totalorder %s22_s11, 4   ;;  %s4319_s10 = smov %s4321_s13 }
 0xb2b   :  { %21 = sbr.rel (!%p19_p4) target bundleno = 8 (0x8), region = 121 }
 0xb32   :  { %2953 = vsyncpa [#allocation4], 1 }
 0xb33   :  { %2955 = vsyncpa [#allocation4 + $0x1], 1 }
 0xb34   :  { %2956 = vsyncpa [#allocation7], 1 }
 0xb35   :  { %2957 = vsyncpa [#allocation5], 1 }
 0xb36   :  { %2959 = vsyncpa [#allocation5 + $0x1], 1 }

</bundles_post_ra>
